<compile_context>
chip_gen: v7x
topology: tpu7x:2x2x1
jax: 0.10.0
libtpu: 0.0.40
codegen_flags: <defaults>
</compile_context>

<pallas_src>
import jax
import jax.numpy as jnp
from jax import lax
from jax.experimental import pallas as pl
from jax.experimental.pallas import tpu as pltpu


_VMEM = pl.BlockSpec(memory_space=pltpu.MemorySpace.VMEM)


def _lstm_cell(gates, c_prev, hw):
    """LSTM cell. gates: (B, 4*hw) columns [i | f | o | g], each hw wide.

    For mid (fused-direction) layers hw = 2H and each gate block is [fwd|bwd],
    so the update is applied to both directions at once.
    """
    sg = jax.nn.sigmoid(gates[:, : 3 * hw])      # one contiguous sigmoid slice
    g = jnp.tanh(gates[:, 3 * hw:])              # one contiguous tanh slice
    i = sg[:, :hw]
    f = sg[:, hw: 2 * hw]
    o = sg[:, 2 * hw:]
    c = f * c_prev + i * g
    h = o * jnp.tanh(c)
    return h, c


def _make_textrnn_kernel(num_mid, T, B, H):
    """Fused kernel: num_mid full bidirectional layers + last layer + FC."""

    def _run_mid_layer(x_bf16, wih_ref, whh_ref, b_ref, act_ref):
        # Hoisted input projection for both directions: one MXU dot.
        gx = jnp.dot(x_bf16, wih_ref[...],
                     preferred_element_type=jnp.float32) + b_ref[...]  # (T*B, 8H) f32
        whh = whh_ref[...]                                             # (2H, 8H) bf16
        # fwd columns are the first H of every 2H gate block (loop-invariant mask).
        cols = lax.broadcasted_iota(jnp.int32, (B, 8 * H), 1)
        fwd_mask = (cols % (2 * H)) < H
        h = jnp.zeros((B, 2 * H), jnp.float32)
        c = jnp.zeros((B, 2 * H), jnp.float32)
        # TODO(synk): for production T switch this full static unroll to a
        # lax.fori_loop with a partial unroll factor of 4-8.
        for t in range(T):
            tb = T - 1 - t
            # fwd gate columns take time t, bwd columns take time T-1-t.
            gx_t = jnp.where(fwd_mask,
                             gx[t * B:(t + 1) * B, :],
                             gx[tb * B:(tb + 1) * B, :])
            gates = gx_t + jnp.dot(h.astype(jnp.bfloat16), whh,
                                   preferred_element_type=jnp.float32)
            h, c = _lstm_cell(gates, c, 2 * H)
            # Write h_f / h_b straight into the inter-layer slab (no staging).
            act_ref[t * B:(t + 1) * B, 0:H] = h[:, 0:H]
            act_ref[tb * B:(tb + 1) * B, H:2 * H] = h[:, H:2 * H]

    def _run_last_layer_fc(x_bf16, wih_f_ref, whh_f_ref, b_f_ref,
                           wih_b_ref, b_b_ref, fcw_ref, fcb_ref, out_ref):
        zeros = jnp.zeros((B, H), jnp.float32)
        # Backward direction at the last time step == its FIRST recurrence
        # step (zero state, no W_hh). Hoisted ahead of the forward recurrence
        # together with its FC contribution.
        x_last = x_bf16[(T - 1) * B:T * B, :]
        gates_b = jnp.dot(x_last, wih_b_ref[...],
                          preferred_element_type=jnp.float32) + b_b_ref[...]
        h_b, _ = _lstm_cell(gates_b, zeros, H)
        logits = jnp.dot(h_b, fcw_ref[H:2 * H, :],
                         preferred_element_type=jnp.float32) + fcb_ref[...]

        # Forward recurrence: only the final hidden state is needed.
        gx = jnp.dot(x_bf16, wih_f_ref[...],
                     preferred_element_type=jnp.float32) + b_f_ref[...]  # (T*B, 4H)
        whh_f = whh_f_ref[...]
        h_f, c_f = zeros, zeros
        for t in range(T):
            gates = gx[t * B:(t + 1) * B, :] + jnp.dot(
                h_f.astype(jnp.bfloat16), whh_f,
                preferred_element_type=jnp.float32)
            h_f, c_f = _lstm_cell(gates, c_f, H)

        out_ref[...] = logits + jnp.dot(h_f, fcw_ref[0:H, :],
                                        preferred_element_type=jnp.float32)

    def kernel(*refs):
        x_ref = refs[0]
        idx = 1
        mids = []
        for _ in range(num_mid):
            mids.append(refs[idx:idx + 3])
            idx += 3
        (wih_f_ref, whh_f_ref, b_f_ref, wih_b_ref, b_b_ref,
         fcw_ref, fcb_ref) = refs[idx:idx + 7]
        idx += 7
        out_ref = refs[idx]
        acts = refs[idx + 1:]                        # inter-layer VMEM slabs

        cur = x_ref[...]                             # (T*B, E) bf16
        for l, (wih_ref, whh_ref, b_ref) in enumerate(mids):
            act_ref = acts[l % len(acts)]
            _run_mid_layer(cur, wih_ref, whh_ref, b_ref, act_ref)
            cur = act_ref[...].astype(jnp.bfloat16)  # VMEM-resident handoff
        _run_last_layer_fc(cur, wih_f_ref, whh_f_ref, b_f_ref,
                           wih_b_ref, b_b_ref, fcw_ref, fcb_ref, out_ref)

    return kernel


# ----------------------------------------------------------------------------
# Wrapper
# ----------------------------------------------------------------------------
def textrnn_forward(x, params):
    """Reproduces Model.forward.

    x: tuple (tokens, seq_len) with tokens int32 (B, T)  [batch_first]
    Returns logits (B, num_classes), float32.
    """
    tokens, _ = x                                   # seq_len unused (matches ref)
    B, T = tokens.shape
    last = params["lstm"][-1]
    H = last["whh_f"].shape[0]
    C = params["fc_w"].shape[1]
    num_mid = len(params["lstm"]) - 1

    # TODO(synk): embedding gather kept as jnp.take glue (data-dependent gather;
    # not worth a manual-DMA Pallas kernel at these shapes).
    emb = jnp.take(params["embedding"], tokens, axis=0)         # (B, T, E)
    h = jnp.transpose(emb, (1, 0, 2)).astype(jnp.float32)       # (T, B, E)

    # pad batch to a multiple of 8: full f32 sublanes, aligned time slices
    Bp = -(-B // 8) * 8
    if Bp != B:
        h = jnp.pad(h, ((0, 0), (0, Bp - B), (0, 0)))
    x2d = h.reshape(T * Bp, h.shape[-1]).astype(jnp.bfloat16)   # bf16 MXU operand

    args = [x2d]
    for l in range(num_mid):
        layer = params["lstm"][l]
        args += [layer["wih_cat"], layer["whh_bd"], layer["b_cat"]]
    args += [last["wih_f"], last["whh_f"], last["b_f"],
             last["wih_b"], last["b_b"], params["fc_w"], params["fc_b"]]

    n_slabs = min(num_mid, 2)                        # ping-pong inter-layer slabs
    kernel = _make_textrnn_kernel(num_mid, T, Bp, H)

    # TODO(synk): nn.LSTM inter-layer dropout is train-only; inference
    # semantics (no dropout) are implemented here.
    # TODO(synk): for production shapes add a batch-tiled grid axis with
    # dimension_semantics=("parallel",) and an explicit vmem_limit_bytes
    # (v7x has only 64 MiB VMEM); whole-array VMEM residency is fine here.
    logits = pl.pallas_call(
        kernel,
        out_shape=jax.ShapeDtypeStruct((Bp, C), jnp.float32),
        in_specs=[_VMEM] * len(args),
        out_specs=_VMEM,
        scratch_shapes=[pltpu.VMEM((T * Bp, 2 * H), jnp.float32)
                        for _ in range(n_slabs)],
    )(*args)
    return logits[:B]


# ----------------------------------------------------------------------------
# Deterministic parameter construction (matches nn.Module __init__ shapes)
# ----------------------------------------------------------------------------
def make_params(key, n_vocab, embed, hidden, num_layers, num_classes):
    H = hidden
    k_hh = 1.0 / float(H) ** 0.5
    keys = iter(jax.random.split(key, 3 + 32 * num_layers))

    emb_table = jax.random.normal(next(keys), (n_vocab, embed), jnp.float32)
    emb_table = emb_table.at[n_vocab - 1].set(0.0)              # padding_idx row

    def u(shape):
        return jax.random.uniform(next(keys), shape, jnp.float32, -k_hh, k_hh)

    layers = []
    in_dim = embed
    for _ in range(num_layers):
        # Per-direction, per-gate blocks in kernel gate order [i, f, o, g].
        # NOTE: real PyTorch nn.LSTM weights are stored in [i, f, g, o] blocks;
        # loading them would need a column permutation + transpose (same math).
        wih = {d: [u((in_dim, H)) for _ in range(4)] for d in ("f", "b")}
        whh = {d: [u((H, H)) for _ in range(4)] for d in ("f", "b")}
        bias = {d: [u((1, H)) + u((1, H)) for _ in range(4)] for d in ("f", "b")}

        # Fused mid-layer layout: gate-major, direction-minor
        # columns = [i_f, i_b, f_f, f_b, o_f, o_b, g_f, g_b], each H wide.
        wih_cat = jnp.concatenate(
            [m for g in range(4) for m in (wih["f"][g], wih["b"][g])], axis=1)
        b_cat = jnp.concatenate(
            [m for g in range(4) for m in (bias["f"][g], bias["b"][g])], axis=1)
        zhh = jnp.zeros((H, H), jnp.float32)
        whh_bd = jnp.concatenate(
            [jnp.concatenate(
                [jnp.concatenate([whh["f"][g], zhh], axis=1),
                 jnp.concatenate([zhh, whh["b"][g]], axis=1)], axis=0)
             for g in range(4)], axis=1)                        # (2H, 8H) block-diag

        # Last-layer (per-direction) layout: [i | f | o | g]
        wih_f = jnp.concatenate(wih["f"], axis=1)               # (in_dim, 4H)
        whh_f = jnp.concatenate(whh["f"], axis=1)               # (H, 4H)
        b_f = jnp.concatenate(bias["f"], axis=1)                # (1, 4H)
        wih_b = jnp.concatenate(wih["b"], axis=1)
        b_b = jnp.concatenate(bias["b"], axis=1)

        layers.append({
            # matmul operands stored in bf16; biases stay f32
            "wih_cat": wih_cat.astype(jnp.bfloat16),
            "whh_bd": whh_bd.astype(jnp.bfloat16),
            "b_cat": b_cat,
            "wih_f": wih_f.astype(jnp.bfloat16),
            "whh_f": whh_f.astype(jnp.bfloat16),
            "b_f": b_f,
            "wih_b": wih_b.astype(jnp.bfloat16),
            "b_b": b_b,
        })
        in_dim = 2 * H

    k_fc = 1.0 / float(2 * H) ** 0.5
    fc_w = jax.random.uniform(next(keys), (2 * H, num_classes),
                              jnp.float32, -k_fc, k_fc)
    fc_b = jax.random.uniform(next(keys), (1, num_classes),
                              jnp.float32, -k_fc, k_fc)

    return {"embedding": emb_table, "lstm": layers, "fc_w": fc_w, "fc_b": fc_b}


# ----------------------------------------------------------------------------
if __name__ == "__main__":
    # Small config consistent with TextRNN
    n_vocab, embed, hidden, num_layers, num_classes = 64, 32, 32, 2, 8
    batch, seq_len = 4, 8

    key = jax.random.PRNGKey(0)
    k_tok, k_par = jax.random.split(key)

    tokens = jax.random.randint(k_tok, (batch, seq_len), 0, n_vocab, jnp.int32)
    lengths = jnp.full((batch,), seq_len, jnp.int32)    # unused (matches forward)
    params = make_params(k_par, n_vocab, embed, hidden, num_layers, num_classes)

    logits = textrnn_forward((tokens, lengths), params)
    jax.block_until_ready(logits)

    assert logits.shape == (batch, num_classes)
    assert logits.dtype == jnp.float32
    print("KERNEL_OK")
</pallas_src>

<mosaic_0001>
module attributes {stable_mosaic.version = 11 : i64} {
  func.func @kernel(%arg0: memref<64x32xbf16, #tpu.memory_space<vmem>>, %arg1: memref<32x256xbf16, #tpu.memory_space<vmem>>, %arg2: memref<64x256xbf16, #tpu.memory_space<vmem>>, %arg3: memref<1x256xf32, #tpu.memory_space<vmem>>, %arg4: memref<64x128xbf16, #tpu.memory_space<vmem>>, %arg5: memref<32x128xbf16, #tpu.memory_space<vmem>>, %arg6: memref<1x128xf32, #tpu.memory_space<vmem>>, %arg7: memref<64x128xbf16, #tpu.memory_space<vmem>>, %arg8: memref<1x128xf32, #tpu.memory_space<vmem>>, %arg9: memref<64x8xf32, #tpu.memory_space<vmem>>, %arg10: memref<1x8xf32, #tpu.memory_space<vmem>>, %arg11: memref<8x8xf32, #tpu.memory_space<vmem>>, %arg12: memref<64x64xf32, #tpu.memory_space<vmem>>) attributes {dimension_semantics = [], scalar_prefetch = 0 : i64, scratch_operands = 1 : i64, tpu.core_type = #tpu.core_type<tc>} {
    %c0 = arith.constant 0 : index
    %c0_0 = arith.constant 0 : index
    %0 = vector.load %arg0[%c0, %c0_0] : memref<64x32xbf16, #tpu.memory_space<vmem>>, vector<64x32xbf16>
    %c0_1 = arith.constant 0 : index
    %c0_2 = arith.constant 0 : index
    %1 = vector.load %arg1[%c0_1, %c0_2] : memref<32x256xbf16, #tpu.memory_space<vmem>>, vector<32x256xbf16>
    %cst = arith.constant dense<0.000000e+00> : vector<64x256xf32>
    %2 = tpu.matmul %0, %1, %cst {dimension_numbers = #tpu.dot_dimension_numbers<[1], [0], [0], [1], [0, 0, 1, 1], [], []>} : vector<64x32xbf16>, vector<32x256xbf16>, vector<64x256xf32> -> vector<64x256xf32>
    %c0_3 = arith.constant 0 : index
    %c0_4 = arith.constant 0 : index
    %3 = vector.load %arg3[%c0_3, %c0_4] : memref<1x256xf32, #tpu.memory_space<vmem>>, vector<1x256xf32>
    %4 = vector.broadcast %3 : vector<1x256xf32> to vector<64x256xf32>
    %5 = arith.addf %2, %4 : vector<64x256xf32>
    %c0_5 = arith.constant 0 : index
    %c0_6 = arith.constant 0 : index
    %6 = vector.load %arg2[%c0_5, %c0_6] : memref<64x256xbf16, #tpu.memory_space<vmem>>, vector<64x256xbf16>
    %7 = tpu.iota {dimensions = array<i32: 1>} : vector<8x256xi32>
    %c64_i32 = arith.constant 64 : i32
    %c0_i32 = arith.constant 0 : i32
    %8 = arith.cmpi eq, %c64_i32, %c0_i32 : i32
    %c1_i32 = arith.constant 1 : i32
    %9 = arith.select %8, %c1_i32, %c64_i32 : i32
    %10 = vector.broadcast %9 : i32 to vector<8x256xi32>
    %11 = arith.remsi %7, %10 : vector<8x256xi32>
    %c0_i32_7 = arith.constant 0 : i32
    %12 = vector.broadcast %c0_i32_7 : i32 to vector<8x256xi32>
    %13 = arith.cmpi ne, %11, %12 : vector<8x256xi32>
    %c0_i32_8 = arith.constant 0 : i32
    %14 = vector.broadcast %c0_i32_8 : i32 to vector<8x256xi32>
    %15 = arith.cmpi slt, %11, %14 : vector<8x256xi32>
    %c0_i32_9 = arith.constant 0 : i32
    %16 = arith.cmpi slt, %9, %c0_i32_9 : i32
    %17 = vector.broadcast %16 : i1 to vector<8x256xi1>
    %18 = vector.broadcast %17 : vector<8x256xi1> to vector<8x256xi1>
    %19 = arith.xori %15, %18 : vector<8x256xi1>
    %20 = arith.andi %19, %13 : vector<8x256xi1>
    %21 = vector.broadcast %9 : i32 to vector<8x256xi32>
    %22 = arith.addi %11, %21 : vector<8x256xi32>
    %23 = arith.select %20, %22, %11 : vector<8x256xi1>, vector<8x256xi32>
    %c32_i32 = arith.constant 32 : i32
    %24 = vector.broadcast %c32_i32 : i32 to vector<8x256xi32>
    %25 = arith.cmpi slt, %23, %24 : vector<8x256xi32>
    %cst_10 = arith.constant 0.000000e+00 : f32
    %26 = vector.broadcast %cst_10 : f32 to vector<8x64xf32>
    %cst_11 = arith.constant 0.000000e+00 : f32
    %27 = vector.broadcast %cst_11 : f32 to vector<8x64xf32>
    %28 = vector.extract_strided_slice %5 {offsets = [0, 0], sizes = [8, 256], strides = [1, 1]} : vector<64x256xf32> to vector<8x256xf32>
    %29 = vector.extract_strided_slice %5 {offsets = [56, 0], sizes = [8, 256], strides = [1, 1]} : vector<64x256xf32> to vector<8x256xf32>
    %30 = arith.select %25, %28, %29 : vector<8x256xi1>, vector<8x256xf32>
    %31 = arith.truncf %26 : vector<8x64xf32> to vector<8x64xbf16>
    %cst_12 = arith.constant dense<0.000000e+00> : vector<8x256xf32>
    %32 = tpu.matmul %31, %6, %cst_12 {dimension_numbers = #tpu.dot_dimension_numbers<[1], [0], [0], [1], [0, 0, 1, 1], [], []>} : vector<8x64xbf16>, vector<64x256xbf16>, vector<8x256xf32> -> vector<8x256xf32>
    %33 = arith.addf %30, %32 : vector<8x256xf32>
    %34 = vector.extract_strided_slice %33 {offsets = [0, 0], sizes = [8, 192], strides = [1, 1]} : vector<8x256xf32> to vector<8x192xf32>
    %35 = arith.negf %34 : vector<8x192xf32>
    %36 = math.exp %35 : vector<8x192xf32>
    %cst_13 = arith.constant 1.000000e+00 : f32
    %37 = vector.broadcast %cst_13 : f32 to vector<8x192xf32>
    %38 = arith.addf %37, %36 : vector<8x192xf32>
    %39 = arith.divf %37, %38 : vector<8x192xf32>
    %40 = vector.extract_strided_slice %33 {offsets = [0, 192], sizes = [8, 64], strides = [1, 1]} : vector<8x256xf32> to vector<8x64xf32>
    %41 = math.tanh %40 : vector<8x64xf32>
    %42 = vector.extract_strided_slice %39 {offsets = [0, 0], sizes = [8, 64], strides = [1, 1]} : vector<8x192xf32> to vector<8x64xf32>
    %43 = vector.extract_strided_slice %39 {offsets = [0, 64], sizes = [8, 64], strides = [1, 1]} : vector<8x192xf32> to vector<8x64xf32>
    %44 = vector.extract_strided_slice %39 {offsets = [0, 128], sizes = [8, 64], strides = [1, 1]} : vector<8x192xf32> to vector<8x64xf32>
    %45 = arith.mulf %43, %27 : vector<8x64xf32>
    %46 = arith.mulf %42, %41 : vector<8x64xf32>
    %47 = arith.addf %45, %46 : vector<8x64xf32>
    %48 = math.tanh %47 : vector<8x64xf32>
    %49 = arith.mulf %44, %48 : vector<8x64xf32>
    %50 = vector.extract_strided_slice %49 {offsets = [0, 0], sizes = [8, 32], strides = [1, 1]} : vector<8x64xf32> to vector<8x32xf32>
    %c0_14 = arith.constant 0 : index
    %c0_15 = arith.constant 0 : index
    %51 = vector.load %arg12[%c0_14, %c0_15] : memref<64x64xf32, #tpu.memory_space<vmem>>, vector<8x32xf32>
    tpu.vector_store %arg12[%c0_14, %c0_15], %50 {strides = array<i32>} : memref<64x64xf32, #tpu.memory_space<vmem>>, vector<8x32xf32>,
    %52 = vector.extract_strided_slice %49 {offsets = [0, 32], sizes = [8, 32], strides = [1, 1]} : vector<8x64xf32> to vector<8x32xf32>
    %c56 = arith.constant 56 : index
    %c32 = arith.constant 32 : index
    %53 = vector.load %arg12[%c56, %c32] : memref<64x64xf32, #tpu.memory_space<vmem>>, vector<8x32xf32>
    tpu.vector_store %arg12[%c56, %c32], %52 {strides = array<i32>} : memref<64x64xf32, #tpu.memory_space<vmem>>, vector<8x32xf32>,
    %54 = vector.extract_strided_slice %5 {offsets = [8, 0], sizes = [8, 256], strides = [1, 1]} : vector<64x256xf32> to vector<8x256xf32>
    %55 = vector.extract_strided_slice %5 {offsets = [48, 0], sizes = [8, 256], strides = [1, 1]} : vector<64x256xf32> to vector<8x256xf32>
    %56 = arith.select %25, %54, %55 : vector<8x256xi1>, vector<8x256xf32>
    %57 = arith.truncf %49 : vector<8x64xf32> to vector<8x64xbf16>
    %cst_16 = arith.constant dense<0.000000e+00> : vector<8x256xf32>
    %58 = tpu.matmul %57, %6, %cst_16 {dimension_numbers = #tpu.dot_dimension_numbers<[1], [0], [0], [1], [0, 0, 1, 1], [], []>} : vector<8x64xbf16>, vector<64x256xbf16>, vector<8x256xf32> -> vector<8x256xf32>
    %59 = arith.addf %56, %58 : vector<8x256xf32>
    %60 = vector.extract_strided_slice %59 {offsets = [0, 0], sizes = [8, 192], strides = [1, 1]} : vector<8x256xf32> to vector<8x192xf32>
    %61 = arith.negf %60 : vector<8x192xf32>
    %62 = math.exp %61 : vector<8x192xf32>
    %cst_17 = arith.constant 1.000000e+00 : f32
    %63 = vector.broadcast %cst_17 : f32 to vector<8x192xf32>
    %64 = arith.addf %63, %62 : vector<8x192xf32>
    %65 = arith.divf %63, %64 : vector<8x192xf32>
    %66 = vector.extract_strided_slice %59 {offsets = [0, 192], sizes = [8, 64], strides = [1, 1]} : vector<8x256xf32> to vector<8x64xf32>
    %67 = math.tanh %66 : vector<8x64xf32>
    %68 = vector.extract_strided_slice %65 {offsets = [0, 0], sizes = [8, 64], strides = [1, 1]} : vector<8x192xf32> to vector<8x64xf32>
    %69 = vector.extract_strided_slice %65 {offsets = [0, 64], sizes = [8, 64], strides = [1, 1]} : vector<8x192xf32> to vector<8x64xf32>
    %70 = vector.extract_strided_slice %65 {offsets = [0, 128], sizes = [8, 64], strides = [1, 1]} : vector<8x192xf32> to vector<8x64xf32>
    %71 = arith.mulf %69, %47 : vector<8x64xf32>
    %72 = arith.mulf %68, %67 : vector<8x64xf32>
    %73 = arith.addf %71, %72 : vector<8x64xf32>
    %74 = math.tanh %73 : vector<8x64xf32>
    %75 = arith.mulf %70, %74 : vector<8x64xf32>
    %76 = vector.extract_strided_slice %75 {offsets = [0, 0], sizes = [8, 32], strides = [1, 1]} : vector<8x64xf32> to vector<8x32xf32>
    %c8 = arith.constant 8 : index
    %c0_18 = arith.constant 0 : index
    %77 = vector.load %arg12[%c8, %c0_18] : memref<64x64xf32, #tpu.memory_space<vmem>>, vector<8x32xf32>
    tpu.vector_store %arg12[%c8, %c0_18], %76 {strides = array<i32>} : memref<64x64xf32, #tpu.memory_space<vmem>>, vector<8x32xf32>,
    %78 = vector.extract_strided_slice %75 {offsets = [0, 32], sizes = [8, 32], strides = [1, 1]} : vector<8x64xf32> to vector<8x32xf32>
    %c48 = arith.constant 48 : index
    %c32_19 = arith.constant 32 : index
    %79 = vector.load %arg12[%c48, %c32_19] : memref<64x64xf32, #tpu.memory_space<vmem>>, vector<8x32xf32>
    tpu.vector_store %arg12[%c48, %c32_19], %78 {strides = array<i32>} : memref<64x64xf32, #tpu.memory_space<vmem>>, vector<8x32xf32>,
    %80 = vector.extract_strided_slice %5 {offsets = [16, 0], sizes = [8, 256], strides = [1, 1]} : vector<64x256xf32> to vector<8x256xf32>
    %81 = vector.extract_strided_slice %5 {offsets = [40, 0], sizes = [8, 256], strides = [1, 1]} : vector<64x256xf32> to vector<8x256xf32>
    %82 = arith.select %25, %80, %81 : vector<8x256xi1>, vector<8x256xf32>
    %83 = arith.truncf %75 : vector<8x64xf32> to vector<8x64xbf16>
    %cst_20 = arith.constant dense<0.000000e+00> : vector<8x256xf32>
    %84 = tpu.matmul %83, %6, %cst_20 {dimension_numbers = #tpu.dot_dimension_numbers<[1], [0], [0], [1], [0, 0, 1, 1], [], []>} : vector<8x64xbf16>, vector<64x256xbf16>, vector<8x256xf32> -> vector<8x256xf32>
    %85 = arith.addf %82, %84 : vector<8x256xf32>
    %86 = vector.extract_strided_slice %85 {offsets = [0, 0], sizes = [8, 192], strides = [1, 1]} : vector<8x256xf32> to vector<8x192xf32>
    %87 = arith.negf %86 : vector<8x192xf32>
    %88 = math.exp %87 : vector<8x192xf32>
    %cst_21 = arith.constant 1.000000e+00 : f32
    %89 = vector.broadcast %cst_21 : f32 to vector<8x192xf32>
    %90 = arith.addf %89, %88 : vector<8x192xf32>
    %91 = arith.divf %89, %90 : vector<8x192xf32>
    %92 = vector.extract_strided_slice %85 {offsets = [0, 192], sizes = [8, 64], strides = [1, 1]} : vector<8x256xf32> to vector<8x64xf32>
    %93 = math.tanh %92 : vector<8x64xf32>
    %94 = vector.extract_strided_slice %91 {offsets = [0, 0], sizes = [8, 64], strides = [1, 1]} : vector<8x192xf32> to vector<8x64xf32>
    %95 = vector.extract_strided_slice %91 {offsets = [0, 64], sizes = [8, 64], strides = [1, 1]} : vector<8x192xf32> to vector<8x64xf32>
    %96 = vector.extract_strided_slice %91 {offsets = [0, 128], sizes = [8, 64], strides = [1, 1]} : vector<8x192xf32> to vector<8x64xf32>
    %97 = arith.mulf %95, %73 : vector<8x64xf32>
    %98 = arith.mulf %94, %93 : vector<8x64xf32>
    %99 = arith.addf %97, %98 : vector<8x64xf32>
    %100 = math.tanh %99 : vector<8x64xf32>
    %101 = arith.mulf %96, %100 : vector<8x64xf32>
    %102 = vector.extract_strided_slice %101 {offsets = [0, 0], sizes = [8, 32], strides = [1, 1]} : vector<8x64xf32> to vector<8x32xf32>
    %c16 = arith.constant 16 : index
    %c0_22 = arith.constant 0 : index
    %103 = vector.load %arg12[%c16, %c0_22] : memref<64x64xf32, #tpu.memory_space<vmem>>, vector<8x32xf32>
    tpu.vector_store %arg12[%c16, %c0_22], %102 {strides = array<i32>} : memref<64x64xf32, #tpu.memory_space<vmem>>, vector<8x32xf32>,
    %104 = vector.extract_strided_slice %101 {offsets = [0, 32], sizes = [8, 32], strides = [1, 1]} : vector<8x64xf32> to vector<8x32xf32>
    %c40 = arith.constant 40 : index
    %c32_23 = arith.constant 32 : index
    %105 = vector.load %arg12[%c40, %c32_23] : memref<64x64xf32, #tpu.memory_space<vmem>>, vector<8x32xf32>
    tpu.vector_store %arg12[%c40, %c32_23], %104 {strides = array<i32>} : memref<64x64xf32, #tpu.memory_space<vmem>>, vector<8x32xf32>,
    %106 = vector.extract_strided_slice %5 {offsets = [24, 0], sizes = [8, 256], strides = [1, 1]} : vector<64x256xf32> to vector<8x256xf32>
    %107 = vector.extract_strided_slice %5 {offsets = [32, 0], sizes = [8, 256], strides = [1, 1]} : vector<64x256xf32> to vector<8x256xf32>
    %108 = arith.select %25, %106, %107 : vector<8x256xi1>, vector<8x256xf32>
    %109 = arith.truncf %101 : vector<8x64xf32> to vector<8x64xbf16>
    %cst_24 = arith.constant dense<0.000000e+00> : vector<8x256xf32>
    %110 = tpu.matmul %109, %6, %cst_24 {dimension_numbers = #tpu.dot_dimension_numbers<[1], [0], [0], [1], [0, 0, 1, 1], [], []>} : vector<8x64xbf16>, vector<64x256xbf16>, vector<8x256xf32> -> vector<8x256xf32>
    %111 = arith.addf %108, %110 : vector<8x256xf32>
    %112 = vector.extract_strided_slice %111 {offsets = [0, 0], sizes = [8, 192], strides = [1, 1]} : vector<8x256xf32> to vector<8x192xf32>
    %113 = arith.negf %112 : vector<8x192xf32>
    %114 = math.exp %113 : vector<8x192xf32>
    %cst_25 = arith.constant 1.000000e+00 : f32
    %115 = vector.broadcast %cst_25 : f32 to vector<8x192xf32>
    %116 = arith.addf %115, %114 : vector<8x192xf32>
    %117 = arith.divf %115, %116 : vector<8x192xf32>
    %118 = vector.extract_strided_slice %111 {offsets = [0, 192], sizes = [8, 64], strides = [1, 1]} : vector<8x256xf32> to vector<8x64xf32>
    %119 = math.tanh %118 : vector<8x64xf32>
    %120 = vector.extract_strided_slice %117 {offsets = [0, 0], sizes = [8, 64], strides = [1, 1]} : vector<8x192xf32> to vector<8x64xf32>
    %121 = vector.extract_strided_slice %117 {offsets = [0, 64], sizes = [8, 64], strides = [1, 1]} : vector<8x192xf32> to vector<8x64xf32>
    %122 = vector.extract_strided_slice %117 {offsets = [0, 128], sizes = [8, 64], strides = [1, 1]} : vector<8x192xf32> to vector<8x64xf32>
    %123 = arith.mulf %121, %99 : vector<8x64xf32>
    %124 = arith.mulf %120, %119 : vector<8x64xf32>
    %125 = arith.addf %123, %124 : vector<8x64xf32>
    %126 = math.tanh %125 : vector<8x64xf32>
    %127 = arith.mulf %122, %126 : vector<8x64xf32>
    %128 = vector.extract_strided_slice %127 {offsets = [0, 0], sizes = [8, 32], strides = [1, 1]} : vector<8x64xf32> to vector<8x32xf32>
    %c24 = arith.constant 24 : index
    %c0_26 = arith.constant 0 : index
    %129 = vector.load %arg12[%c24, %c0_26] : memref<64x64xf32, #tpu.memory_space<vmem>>, vector<8x32xf32>
    tpu.vector_store %arg12[%c24, %c0_26], %128 {strides = array<i32>} : memref<64x64xf32, #tpu.memory_space<vmem>>, vector<8x32xf32>,
    %130 = vector.extract_strided_slice %127 {offsets = [0, 32], sizes = [8, 32], strides = [1, 1]} : vector<8x64xf32> to vector<8x32xf32>
    %c32_27 = arith.constant 32 : index
    %c32_28 = arith.constant 32 : index
    %131 = vector.load %arg12[%c32_27, %c32_28] : memref<64x64xf32, #tpu.memory_space<vmem>>, vector<8x32xf32>
    tpu.vector_store %arg12[%c32_27, %c32_28], %130 {strides = array<i32>} : memref<64x64xf32, #tpu.memory_space<vmem>>, vector<8x32xf32>,
    %132 = vector.extract_strided_slice %5 {offsets = [32, 0], sizes = [8, 256], strides = [1, 1]} : vector<64x256xf32> to vector<8x256xf32>
    %133 = vector.extract_strided_slice %5 {offsets = [24, 0], sizes = [8, 256], strides = [1, 1]} : vector<64x256xf32> to vector<8x256xf32>
    %134 = arith.select %25, %132, %133 : vector<8x256xi1>, vector<8x256xf32>
    %135 = arith.truncf %127 : vector<8x64xf32> to vector<8x64xbf16>
    %cst_29 = arith.constant dense<0.000000e+00> : vector<8x256xf32>
    %136 = tpu.matmul %135, %6, %cst_29 {dimension_numbers = #tpu.dot_dimension_numbers<[1], [0], [0], [1], [0, 0, 1, 1], [], []>} : vector<8x64xbf16>, vector<64x256xbf16>, vector<8x256xf32> -> vector<8x256xf32>
    %137 = arith.addf %134, %136 : vector<8x256xf32>
    %138 = vector.extract_strided_slice %137 {offsets = [0, 0], sizes = [8, 192], strides = [1, 1]} : vector<8x256xf32> to vector<8x192xf32>
    %139 = arith.negf %138 : vector<8x192xf32>
    %140 = math.exp %139 : vector<8x192xf32>
    %cst_30 = arith.constant 1.000000e+00 : f32
    %141 = vector.broadcast %cst_30 : f32 to vector<8x192xf32>
    %142 = arith.addf %141, %140 : vector<8x192xf32>
    %143 = arith.divf %141, %142 : vector<8x192xf32>
    %144 = vector.extract_strided_slice %137 {offsets = [0, 192], sizes = [8, 64], strides = [1, 1]} : vector<8x256xf32> to vector<8x64xf32>
    %145 = math.tanh %144 : vector<8x64xf32>
    %146 = vector.extract_strided_slice %143 {offsets = [0, 0], sizes = [8, 64], strides = [1, 1]} : vector<8x192xf32> to vector<8x64xf32>
    %147 = vector.extract_strided_slice %143 {offsets = [0, 64], sizes = [8, 64], strides = [1, 1]} : vector<8x192xf32> to vector<8x64xf32>
    %148 = vector.extract_strided_slice %143 {offsets = [0, 128], sizes = [8, 64], strides = [1, 1]} : vector<8x192xf32> to vector<8x64xf32>
    %149 = arith.mulf %147, %125 : vector<8x64xf32>
    %150 = arith.mulf %146, %145 : vector<8x64xf32>
    %151 = arith.addf %149, %150 : vector<8x64xf32>
    %152 = math.tanh %151 : vector<8x64xf32>
    %153 = arith.mulf %148, %152 : vector<8x64xf32>
    %154 = vector.extract_strided_slice %153 {offsets = [0, 0], sizes = [8, 32], strides = [1, 1]} : vector<8x64xf32> to vector<8x32xf32>
    %c32_31 = arith.constant 32 : index
    %c0_32 = arith.constant 0 : index
    %155 = vector.load %arg12[%c32_31, %c0_32] : memref<64x64xf32, #tpu.memory_space<vmem>>, vector<8x32xf32>
    tpu.vector_store %arg12[%c32_31, %c0_32], %154 {strides = array<i32>} : memref<64x64xf32, #tpu.memory_space<vmem>>, vector<8x32xf32>,
    %156 = vector.extract_strided_slice %153 {offsets = [0, 32], sizes = [8, 32], strides = [1, 1]} : vector<8x64xf32> to vector<8x32xf32>
    %c24_33 = arith.constant 24 : index
    %c32_34 = arith.constant 32 : index
    %157 = vector.load %arg12[%c24_33, %c32_34] : memref<64x64xf32, #tpu.memory_space<vmem>>, vector<8x32xf32>
    tpu.vector_store %arg12[%c24_33, %c32_34], %156 {strides = array<i32>} : memref<64x64xf32, #tpu.memory_space<vmem>>, vector<8x32xf32>,
    %158 = vector.extract_strided_slice %5 {offsets = [40, 0], sizes = [8, 256], strides = [1, 1]} : vector<64x256xf32> to vector<8x256xf32>
    %159 = vector.extract_strided_slice %5 {offsets = [16, 0], sizes = [8, 256], strides = [1, 1]} : vector<64x256xf32> to vector<8x256xf32>
    %160 = arith.select %25, %158, %159 : vector<8x256xi1>, vector<8x256xf32>
    %161 = arith.truncf %153 : vector<8x64xf32> to vector<8x64xbf16>
    %cst_35 = arith.constant dense<0.000000e+00> : vector<8x256xf32>
    %162 = tpu.matmul %161, %6, %cst_35 {dimension_numbers = #tpu.dot_dimension_numbers<[1], [0], [0], [1], [0, 0, 1, 1], [], []>} : vector<8x64xbf16>, vector<64x256xbf16>, vector<8x256xf32> -> vector<8x256xf32>
    %163 = arith.addf %160, %162 : vector<8x256xf32>
    %164 = vector.extract_strided_slice %163 {offsets = [0, 0], sizes = [8, 192], strides = [1, 1]} : vector<8x256xf32> to vector<8x192xf32>
    %165 = arith.negf %164 : vector<8x192xf32>
    %166 = math.exp %165 : vector<8x192xf32>
    %cst_36 = arith.constant 1.000000e+00 : f32
    %167 = vector.broadcast %cst_36 : f32 to vector<8x192xf32>
    %168 = arith.addf %167, %166 : vector<8x192xf32>
    %169 = arith.divf %167, %168 : vector<8x192xf32>
    %170 = vector.extract_strided_slice %163 {offsets = [0, 192], sizes = [8, 64], strides = [1, 1]} : vector<8x256xf32> to vector<8x64xf32>
    %171 = math.tanh %170 : vector<8x64xf32>
    %172 = vector.extract_strided_slice %169 {offsets = [0, 0], sizes = [8, 64], strides = [1, 1]} : vector<8x192xf32> to vector<8x64xf32>
    %173 = vector.extract_strided_slice %169 {offsets = [0, 64], sizes = [8, 64], strides = [1, 1]} : vector<8x192xf32> to vector<8x64xf32>
    %174 = vector.extract_strided_slice %169 {offsets = [0, 128], sizes = [8, 64], strides = [1, 1]} : vector<8x192xf32> to vector<8x64xf32>
    %175 = arith.mulf %173, %151 : vector<8x64xf32>
    %176 = arith.mulf %172, %171 : vector<8x64xf32>
    %177 = arith.addf %175, %176 : vector<8x64xf32>
    %178 = math.tanh %177 : vector<8x64xf32>
    %179 = arith.mulf %174, %178 : vector<8x64xf32>
    %180 = vector.extract_strided_slice %179 {offsets = [0, 0], sizes = [8, 32], strides = [1, 1]} : vector<8x64xf32> to vector<8x32xf32>
    %c40_37 = arith.constant 40 : index
    %c0_38 = arith.constant 0 : index
    %181 = vector.load %arg12[%c40_37, %c0_38] : memref<64x64xf32, #tpu.memory_space<vmem>>, vector<8x32xf32>
    tpu.vector_store %arg12[%c40_37, %c0_38], %180 {strides = array<i32>} : memref<64x64xf32, #tpu.memory_space<vmem>>, vector<8x32xf32>,
    %182 = vector.extract_strided_slice %179 {offsets = [0, 32], sizes = [8, 32], strides = [1, 1]} : vector<8x64xf32> to vector<8x32xf32>
    %c16_39 = arith.constant 16 : index
    %c32_40 = arith.constant 32 : index
    %183 = vector.load %arg12[%c16_39, %c32_40] : memref<64x64xf32, #tpu.memory_space<vmem>>, vector<8x32xf32>
    tpu.vector_store %arg12[%c16_39, %c32_40], %182 {strides = array<i32>} : memref<64x64xf32, #tpu.memory_space<vmem>>, vector<8x32xf32>,
    %184 = vector.extract_strided_slice %5 {offsets = [48, 0], sizes = [8, 256], strides = [1, 1]} : vector<64x256xf32> to vector<8x256xf32>
    %185 = vector.extract_strided_slice %5 {offsets = [8, 0], sizes = [8, 256], strides = [1, 1]} : vector<64x256xf32> to vector<8x256xf32>
    %186 = arith.select %25, %184, %185 : vector<8x256xi1>, vector<8x256xf32>
    %187 = arith.truncf %179 : vector<8x64xf32> to vector<8x64xbf16>
    %cst_41 = arith.constant dense<0.000000e+00> : vector<8x256xf32>
    %188 = tpu.matmul %187, %6, %cst_41 {dimension_numbers = #tpu.dot_dimension_numbers<[1], [0], [0], [1], [0, 0, 1, 1], [], []>} : vector<8x64xbf16>, vector<64x256xbf16>, vector<8x256xf32> -> vector<8x256xf32>
    %189 = arith.addf %186, %188 : vector<8x256xf32>
    %190 = vector.extract_strided_slice %189 {offsets = [0, 0], sizes = [8, 192], strides = [1, 1]} : vector<8x256xf32> to vector<8x192xf32>
    %191 = arith.negf %190 : vector<8x192xf32>
    %192 = math.exp %191 : vector<8x192xf32>
    %cst_42 = arith.constant 1.000000e+00 : f32
    %193 = vector.broadcast %cst_42 : f32 to vector<8x192xf32>
    %194 = arith.addf %193, %192 : vector<8x192xf32>
    %195 = arith.divf %193, %194 : vector<8x192xf32>
    %196 = vector.extract_strided_slice %189 {offsets = [0, 192], sizes = [8, 64], strides = [1, 1]} : vector<8x256xf32> to vector<8x64xf32>
    %197 = math.tanh %196 : vector<8x64xf32>
    %198 = vector.extract_strided_slice %195 {offsets = [0, 0], sizes = [8, 64], strides = [1, 1]} : vector<8x192xf32> to vector<8x64xf32>
    %199 = vector.extract_strided_slice %195 {offsets = [0, 64], sizes = [8, 64], strides = [1, 1]} : vector<8x192xf32> to vector<8x64xf32>
    %200 = vector.extract_strided_slice %195 {offsets = [0, 128], sizes = [8, 64], strides = [1, 1]} : vector<8x192xf32> to vector<8x64xf32>
    %201 = arith.mulf %199, %177 : vector<8x64xf32>
    %202 = arith.mulf %198, %197 : vector<8x64xf32>
    %203 = arith.addf %201, %202 : vector<8x64xf32>
    %204 = math.tanh %203 : vector<8x64xf32>
    %205 = arith.mulf %200, %204 : vector<8x64xf32>
    %206 = vector.extract_strided_slice %205 {offsets = [0, 0], sizes = [8, 32], strides = [1, 1]} : vector<8x64xf32> to vector<8x32xf32>
    %c48_43 = arith.constant 48 : index
    %c0_44 = arith.constant 0 : index
    %207 = vector.load %arg12[%c48_43, %c0_44] : memref<64x64xf32, #tpu.memory_space<vmem>>, vector<8x32xf32>
    tpu.vector_store %arg12[%c48_43, %c0_44], %206 {strides = array<i32>} : memref<64x64xf32, #tpu.memory_space<vmem>>, vector<8x32xf32>,
    %208 = vector.extract_strided_slice %205 {offsets = [0, 32], sizes = [8, 32], strides = [1, 1]} : vector<8x64xf32> to vector<8x32xf32>
    %c8_45 = arith.constant 8 : index
    %c32_46 = arith.constant 32 : index
    %209 = vector.load %arg12[%c8_45, %c32_46] : memref<64x64xf32, #tpu.memory_space<vmem>>, vector<8x32xf32>
    tpu.vector_store %arg12[%c8_45, %c32_46], %208 {strides = array<i32>} : memref<64x64xf32, #tpu.memory_space<vmem>>, vector<8x32xf32>,
    %210 = vector.extract_strided_slice %5 {offsets = [56, 0], sizes = [8, 256], strides = [1, 1]} : vector<64x256xf32> to vector<8x256xf32>
    %211 = vector.extract_strided_slice %5 {offsets = [0, 0], sizes = [8, 256], strides = [1, 1]} : vector<64x256xf32> to vector<8x256xf32>
    %212 = arith.select %25, %210, %211 : vector<8x256xi1>, vector<8x256xf32>
    %213 = arith.truncf %205 : vector<8x64xf32> to vector<8x64xbf16>
    %cst_47 = arith.constant dense<0.000000e+00> : vector<8x256xf32>
    %214 = tpu.matmul %213, %6, %cst_47 {dimension_numbers = #tpu.dot_dimension_numbers<[1], [0], [0], [1], [0, 0, 1, 1], [], []>} : vector<8x64xbf16>, vector<64x256xbf16>, vector<8x256xf32> -> vector<8x256xf32>
    %215 = arith.addf %212, %214 : vector<8x256xf32>
    %216 = vector.extract_strided_slice %215 {offsets = [0, 0], sizes = [8, 192], strides = [1, 1]} : vector<8x256xf32> to vector<8x192xf32>
    %217 = arith.negf %216 : vector<8x192xf32>
    %218 = math.exp %217 : vector<8x192xf32>
    %cst_48 = arith.constant 1.000000e+00 : f32
    %219 = vector.broadcast %cst_48 : f32 to vector<8x192xf32>
    %220 = arith.addf %219, %218 : vector<8x192xf32>
    %221 = arith.divf %219, %220 : vector<8x192xf32>
    %222 = vector.extract_strided_slice %215 {offsets = [0, 192], sizes = [8, 64], strides = [1, 1]} : vector<8x256xf32> to vector<8x64xf32>
    %223 = math.tanh %222 : vector<8x64xf32>
    %224 = vector.extract_strided_slice %221 {offsets = [0, 0], sizes = [8, 64], strides = [1, 1]} : vector<8x192xf32> to vector<8x64xf32>
    %225 = vector.extract_strided_slice %221 {offsets = [0, 64], sizes = [8, 64], strides = [1, 1]} : vector<8x192xf32> to vector<8x64xf32>
    %226 = vector.extract_strided_slice %221 {offsets = [0, 128], sizes = [8, 64], strides = [1, 1]} : vector<8x192xf32> to vector<8x64xf32>
    %227 = arith.mulf %225, %203 : vector<8x64xf32>
    %228 = arith.mulf %224, %223 : vector<8x64xf32>
    %229 = arith.addf %227, %228 : vector<8x64xf32>
    %230 = math.tanh %229 : vector<8x64xf32>
    %231 = arith.mulf %226, %230 : vector<8x64xf32>
    %232 = vector.extract_strided_slice %231 {offsets = [0, 0], sizes = [8, 32], strides = [1, 1]} : vector<8x64xf32> to vector<8x32xf32>
    %c56_49 = arith.constant 56 : index
    %c0_50 = arith.constant 0 : index
    %233 = vector.load %arg12[%c56_49, %c0_50] : memref<64x64xf32, #tpu.memory_space<vmem>>, vector<8x32xf32>
    tpu.vector_store %arg12[%c56_49, %c0_50], %232 {strides = array<i32>} : memref<64x64xf32, #tpu.memory_space<vmem>>, vector<8x32xf32>,
    %234 = vector.extract_strided_slice %231 {offsets = [0, 32], sizes = [8, 32], strides = [1, 1]} : vector<8x64xf32> to vector<8x32xf32>
    %c0_51 = arith.constant 0 : index
    %c32_52 = arith.constant 32 : index
    %235 = vector.load %arg12[%c0_51, %c32_52] : memref<64x64xf32, #tpu.memory_space<vmem>>, vector<8x32xf32>
    tpu.vector_store %arg12[%c0_51, %c32_52], %234 {strides = array<i32>} : memref<64x64xf32, #tpu.memory_space<vmem>>, vector<8x32xf32>,
    %c0_53 = arith.constant 0 : index
    %c0_54 = arith.constant 0 : index
    %236 = vector.load %arg12[%c0_53, %c0_54] : memref<64x64xf32, #tpu.memory_space<vmem>>, vector<64x64xf32>
    %237 = arith.truncf %236 : vector<64x64xf32> to vector<64x64xbf16>
    %cst_55 = arith.constant 0.000000e+00 : f32
    %238 = vector.broadcast %cst_55 : f32 to vector<8x32xf32>
    %239 = vector.extract_strided_slice %237 {offsets = [56, 0], sizes = [8, 64], strides = [1, 1]} : vector<64x64xbf16> to vector<8x64xbf16>
    %c0_56 = arith.constant 0 : index
    %c0_57 = arith.constant 0 : index
    %240 = vector.load %arg7[%c0_56, %c0_57] : memref<64x128xbf16, #tpu.memory_space<vmem>>, vector<64x128xbf16>
    %cst_58 = arith.constant dense<0.000000e+00> : vector<8x128xf32>
    %241 = tpu.matmul %239, %240, %cst_58 {dimension_numbers = #tpu.dot_dimension_numbers<[1], [0], [0], [1], [0, 0, 1, 1], [], []>} : vector<8x64xbf16>, vector<64x128xbf16>, vector<8x128xf32> -> vector<8x128xf32>
    %c0_59 = arith.constant 0 : index
    %c0_60 = arith.constant 0 : index
    %242 = vector.load %arg8[%c0_59, %c0_60] : memref<1x128xf32, #tpu.memory_space<vmem>>, vector<1x128xf32>
    %243 = vector.broadcast %242 : vector<1x128xf32> to vector<8x128xf32>
    %244 = arith.addf %241, %243 : vector<8x128xf32>
    %245 = vector.extract_strided_slice %244 {offsets = [0, 0], sizes = [8, 96], strides = [1, 1]} : vector<8x128xf32> to vector<8x96xf32>
    %246 = arith.negf %245 : vector<8x96xf32>
    %247 = math.exp %246 : vector<8x96xf32>
    %cst_61 = arith.constant 1.000000e+00 : f32
    %248 = vector.broadcast %cst_61 : f32 to vector<8x96xf32>
    %249 = arith.addf %248, %247 : vector<8x96xf32>
    %250 = arith.divf %248, %249 : vector<8x96xf32>
    %251 = vector.extract_strided_slice %244 {offsets = [0, 96], sizes = [8, 32], strides = [1, 1]} : vector<8x128xf32> to vector<8x32xf32>
    %252 = math.tanh %251 : vector<8x32xf32>
    %253 = vector.extract_strided_slice %250 {offsets = [0, 0], sizes = [8, 32], strides = [1, 1]} : vector<8x96xf32> to vector<8x32xf32>
    %254 = vector.extract_strided_slice %250 {offsets = [0, 32], sizes = [8, 32], strides = [1, 1]} : vector<8x96xf32> to vector<8x32xf32>
    %255 = vector.extract_strided_slice %250 {offsets = [0, 64], sizes = [8, 32], strides = [1, 1]} : vector<8x96xf32> to vector<8x32xf32>
    %256 = arith.mulf %254, %238 : vector<8x32xf32>
    %257 = arith.mulf %253, %252 : vector<8x32xf32>
    %258 = arith.addf %256, %257 : vector<8x32xf32>
    %259 = math.tanh %258 : vector<8x32xf32>
    %260 = arith.mulf %255, %259 : vector<8x32xf32>
    %c32_62 = arith.constant 32 : index
    %c0_63 = arith.constant 0 : index
    %261 = vector.load %arg9[%c32_62, %c0_63] : memref<64x8xf32, #tpu.memory_space<vmem>>, vector<32x8xf32>
    %cst_64 = arith.constant dense<0.000000e+00> : vector<8x8xf32>
    %262 = tpu.matmul %260, %261, %cst_64 {dimension_numbers = #tpu.dot_dimension_numbers<[1], [0], [0], [1], [0, 0, 1, 1], [], []>} : vector<8x32xf32>, vector<32x8xf32>, vector<8x8xf32> -> vector<8x8xf32>
    %c0_65 = arith.constant 0 : index
    %c0_66 = arith.constant 0 : index
    %263 = vector.load %arg10[%c0_65, %c0_66] : memref<1x8xf32, #tpu.memory_space<vmem>>, vector<1x8xf32>
    %264 = vector.broadcast %263 : vector<1x8xf32> to vector<8x8xf32>
    %265 = arith.addf %262, %264 : vector<8x8xf32>
    %c0_67 = arith.constant 0 : index
    %c0_68 = arith.constant 0 : index
    %266 = vector.load %arg4[%c0_67, %c0_68] : memref<64x128xbf16, #tpu.memory_space<vmem>>, vector<64x128xbf16>
    %cst_69 = arith.constant dense<0.000000e+00> : vector<64x128xf32>
    %267 = tpu.matmul %237, %266, %cst_69 {dimension_numbers = #tpu.dot_dimension_numbers<[1], [0], [0], [1], [0, 0, 1, 1], [], []>} : vector<64x64xbf16>, vector<64x128xbf16>, vector<64x128xf32> -> vector<64x128xf32>
    %c0_70 = arith.constant 0 : index
    %c0_71 = arith.constant 0 : index
    %268 = vector.load %arg6[%c0_70, %c0_71] : memref<1x128xf32, #tpu.memory_space<vmem>>, vector<1x128xf32>
    %269 = vector.broadcast %268 : vector<1x128xf32> to vector<64x128xf32>
    %270 = arith.addf %267, %269 : vector<64x128xf32>
    %c0_72 = arith.constant 0 : index
    %c0_73 = arith.constant 0 : index
    %271 = vector.load %arg5[%c0_72, %c0_73] : memref<32x128xbf16, #tpu.memory_space<vmem>>, vector<32x128xbf16>
    %272 = vector.extract_strided_slice %270 {offsets = [0, 0], sizes = [8, 128], strides = [1, 1]} : vector<64x128xf32> to vector<8x128xf32>
    %273 = arith.truncf %238 : vector<8x32xf32> to vector<8x32xbf16>
    %cst_74 = arith.constant dense<0.000000e+00> : vector<8x128xf32>
    %274 = tpu.matmul %273, %271, %cst_74 {dimension_numbers = #tpu.dot_dimension_numbers<[1], [0], [0], [1], [0, 0, 1, 1], [], []>} : vector<8x32xbf16>, vector<32x128xbf16>, vector<8x128xf32> -> vector<8x128xf32>
    %275 = arith.addf %272, %274 : vector<8x128xf32>
    %276 = vector.extract_strided_slice %275 {offsets = [0, 0], sizes = [8, 96], strides = [1, 1]} : vector<8x128xf32> to vector<8x96xf32>
    %277 = arith.negf %276 : vector<8x96xf32>
    %278 = math.exp %277 : vector<8x96xf32>
    %cst_75 = arith.constant 1.000000e+00 : f32
    %279 = vector.broadcast %cst_75 : f32 to vector<8x96xf32>
    %280 = arith.addf %279, %278 : vector<8x96xf32>
    %281 = arith.divf %279, %280 : vector<8x96xf32>
    %282 = vector.extract_strided_slice %275 {offsets = [0, 96], sizes = [8, 32], strides = [1, 1]} : vector<8x128xf32> to vector<8x32xf32>
    %283 = math.tanh %282 : vector<8x32xf32>
    %284 = vector.extract_strided_slice %281 {offsets = [0, 0], sizes = [8, 32], strides = [1, 1]} : vector<8x96xf32> to vector<8x32xf32>
    %285 = vector.extract_strided_slice %281 {offsets = [0, 32], sizes = [8, 32], strides = [1, 1]} : vector<8x96xf32> to vector<8x32xf32>
    %286 = vector.extract_strided_slice %281 {offsets = [0, 64], sizes = [8, 32], strides = [1, 1]} : vector<8x96xf32> to vector<8x32xf32>
    %287 = arith.mulf %285, %238 : vector<8x32xf32>
    %288 = arith.mulf %284, %283 : vector<8x32xf32>
    %289 = arith.addf %287, %288 : vector<8x32xf32>
    %290 = math.tanh %289 : vector<8x32xf32>
    %291 = arith.mulf %286, %290 : vector<8x32xf32>
    %292 = vector.extract_strided_slice %270 {offsets = [8, 0], sizes = [8, 128], strides = [1, 1]} : vector<64x128xf32> to vector<8x128xf32>
    %293 = arith.truncf %291 : vector<8x32xf32> to vector<8x32xbf16>
    %cst_76 = arith.constant dense<0.000000e+00> : vector<8x128xf32>
    %294 = tpu.matmul %293, %271, %cst_76 {dimension_numbers = #tpu.dot_dimension_numbers<[1], [0], [0], [1], [0, 0, 1, 1], [], []>} : vector<8x32xbf16>, vector<32x128xbf16>, vector<8x128xf32> -> vector<8x128xf32>
    %295 = arith.addf %292, %294 : vector<8x128xf32>
    %296 = vector.extract_strided_slice %295 {offsets = [0, 0], sizes = [8, 96], strides = [1, 1]} : vector<8x128xf32> to vector<8x96xf32>
    %297 = arith.negf %296 : vector<8x96xf32>
    %298 = math.exp %297 : vector<8x96xf32>
    %cst_77 = arith.constant 1.000000e+00 : f32
    %299 = vector.broadcast %cst_77 : f32 to vector<8x96xf32>
    %300 = arith.addf %299, %298 : vector<8x96xf32>
    %301 = arith.divf %299, %300 : vector<8x96xf32>
    %302 = vector.extract_strided_slice %295 {offsets = [0, 96], sizes = [8, 32], strides = [1, 1]} : vector<8x128xf32> to vector<8x32xf32>
    %303 = math.tanh %302 : vector<8x32xf32>
    %304 = vector.extract_strided_slice %301 {offsets = [0, 0], sizes = [8, 32], strides = [1, 1]} : vector<8x96xf32> to vector<8x32xf32>
    %305 = vector.extract_strided_slice %301 {offsets = [0, 32], sizes = [8, 32], strides = [1, 1]} : vector<8x96xf32> to vector<8x32xf32>
    %306 = vector.extract_strided_slice %301 {offsets = [0, 64], sizes = [8, 32], strides = [1, 1]} : vector<8x96xf32> to vector<8x32xf32>
    %307 = arith.mulf %305, %289 : vector<8x32xf32>
    %308 = arith.mulf %304, %303 : vector<8x32xf32>
    %309 = arith.addf %307, %308 : vector<8x32xf32>
    %310 = math.tanh %309 : vector<8x32xf32>
    %311 = arith.mulf %306, %310 : vector<8x32xf32>
    %312 = vector.extract_strided_slice %270 {offsets = [16, 0], sizes = [8, 128], strides = [1, 1]} : vector<64x128xf32> to vector<8x128xf32>
    %313 = arith.truncf %311 : vector<8x32xf32> to vector<8x32xbf16>
    %cst_78 = arith.constant dense<0.000000e+00> : vector<8x128xf32>
    %314 = tpu.matmul %313, %271, %cst_78 {dimension_numbers = #tpu.dot_dimension_numbers<[1], [0], [0], [1], [0, 0, 1, 1], [], []>} : vector<8x32xbf16>, vector<32x128xbf16>, vector<8x128xf32> -> vector<8x128xf32>
    %315 = arith.addf %312, %314 : vector<8x128xf32>
    %316 = vector.extract_strided_slice %315 {offsets = [0, 0], sizes = [8, 96], strides = [1, 1]} : vector<8x128xf32> to vector<8x96xf32>
    %317 = arith.negf %316 : vector<8x96xf32>
    %318 = math.exp %317 : vector<8x96xf32>
    %cst_79 = arith.constant 1.000000e+00 : f32
    %319 = vector.broadcast %cst_79 : f32 to vector<8x96xf32>
    %320 = arith.addf %319, %318 : vector<8x96xf32>
    %321 = arith.divf %319, %320 : vector<8x96xf32>
    %322 = vector.extract_strided_slice %315 {offsets = [0, 96], sizes = [8, 32], strides = [1, 1]} : vector<8x128xf32> to vector<8x32xf32>
    %323 = math.tanh %322 : vector<8x32xf32>
    %324 = vector.extract_strided_slice %321 {offsets = [0, 0], sizes = [8, 32], strides = [1, 1]} : vector<8x96xf32> to vector<8x32xf32>
    %325 = vector.extract_strided_slice %321 {offsets = [0, 32], sizes = [8, 32], strides = [1, 1]} : vector<8x96xf32> to vector<8x32xf32>
    %326 = vector.extract_strided_slice %321 {offsets = [0, 64], sizes = [8, 32], strides = [1, 1]} : vector<8x96xf32> to vector<8x32xf32>
    %327 = arith.mulf %325, %309 : vector<8x32xf32>
    %328 = arith.mulf %324, %323 : vector<8x32xf32>
    %329 = arith.addf %327, %328 : vector<8x32xf32>
    %330 = math.tanh %329 : vector<8x32xf32>
    %331 = arith.mulf %326, %330 : vector<8x32xf32>
    %332 = vector.extract_strided_slice %270 {offsets = [24, 0], sizes = [8, 128], strides = [1, 1]} : vector<64x128xf32> to vector<8x128xf32>
    %333 = arith.truncf %331 : vector<8x32xf32> to vector<8x32xbf16>
    %cst_80 = arith.constant dense<0.000000e+00> : vector<8x128xf32>
    %334 = tpu.matmul %333, %271, %cst_80 {dimension_numbers = #tpu.dot_dimension_numbers<[1], [0], [0], [1], [0, 0, 1, 1], [], []>} : vector<8x32xbf16>, vector<32x128xbf16>, vector<8x128xf32> -> vector<8x128xf32>
    %335 = arith.addf %332, %334 : vector<8x128xf32>
    %336 = vector.extract_strided_slice %335 {offsets = [0, 0], sizes = [8, 96], strides = [1, 1]} : vector<8x128xf32> to vector<8x96xf32>
    %337 = arith.negf %336 : vector<8x96xf32>
    %338 = math.exp %337 : vector<8x96xf32>
    %cst_81 = arith.constant 1.000000e+00 : f32
    %339 = vector.broadcast %cst_81 : f32 to vector<8x96xf32>
    %340 = arith.addf %339, %338 : vector<8x96xf32>
    %341 = arith.divf %339, %340 : vector<8x96xf32>
    %342 = vector.extract_strided_slice %335 {offsets = [0, 96], sizes = [8, 32], strides = [1, 1]} : vector<8x128xf32> to vector<8x32xf32>
    %343 = math.tanh %342 : vector<8x32xf32>
    %344 = vector.extract_strided_slice %341 {offsets = [0, 0], sizes = [8, 32], strides = [1, 1]} : vector<8x96xf32> to vector<8x32xf32>
    %345 = vector.extract_strided_slice %341 {offsets = [0, 32], sizes = [8, 32], strides = [1, 1]} : vector<8x96xf32> to vector<8x32xf32>
    %346 = vector.extract_strided_slice %341 {offsets = [0, 64], sizes = [8, 32], strides = [1, 1]} : vector<8x96xf32> to vector<8x32xf32>
    %347 = arith.mulf %345, %329 : vector<8x32xf32>
    %348 = arith.mulf %344, %343 : vector<8x32xf32>
    %349 = arith.addf %347, %348 : vector<8x32xf32>
    %350 = math.tanh %349 : vector<8x32xf32>
    %351 = arith.mulf %346, %350 : vector<8x32xf32>
    %352 = vector.extract_strided_slice %270 {offsets = [32, 0], sizes = [8, 128], strides = [1, 1]} : vector<64x128xf32> to vector<8x128xf32>
    %353 = arith.truncf %351 : vector<8x32xf32> to vector<8x32xbf16>
    %cst_82 = arith.constant dense<0.000000e+00> : vector<8x128xf32>
    %354 = tpu.matmul %353, %271, %cst_82 {dimension_numbers = #tpu.dot_dimension_numbers<[1], [0], [0], [1], [0, 0, 1, 1], [], []>} : vector<8x32xbf16>, vector<32x128xbf16>, vector<8x128xf32> -> vector<8x128xf32>
    %355 = arith.addf %352, %354 : vector<8x128xf32>
    %356 = vector.extract_strided_slice %355 {offsets = [0, 0], sizes = [8, 96], strides = [1, 1]} : vector<8x128xf32> to vector<8x96xf32>
    %357 = arith.negf %356 : vector<8x96xf32>
    %358 = math.exp %357 : vector<8x96xf32>
    %cst_83 = arith.constant 1.000000e+00 : f32
    %359 = vector.broadcast %cst_83 : f32 to vector<8x96xf32>
    %360 = arith.addf %359, %358 : vector<8x96xf32>
    %361 = arith.divf %359, %360 : vector<8x96xf32>
    %362 = vector.extract_strided_slice %355 {offsets = [0, 96], sizes = [8, 32], strides = [1, 1]} : vector<8x128xf32> to vector<8x32xf32>
    %363 = math.tanh %362 : vector<8x32xf32>
    %364 = vector.extract_strided_slice %361 {offsets = [0, 0], sizes = [8, 32], strides = [1, 1]} : vector<8x96xf32> to vector<8x32xf32>
    %365 = vector.extract_strided_slice %361 {offsets = [0, 32], sizes = [8, 32], strides = [1, 1]} : vector<8x96xf32> to vector<8x32xf32>
    %366 = vector.extract_strided_slice %361 {offsets = [0, 64], sizes = [8, 32], strides = [1, 1]} : vector<8x96xf32> to vector<8x32xf32>
    %367 = arith.mulf %365, %349 : vector<8x32xf32>
    %368 = arith.mulf %364, %363 : vector<8x32xf32>
    %369 = arith.addf %367, %368 : vector<8x32xf32>
    %370 = math.tanh %369 : vector<8x32xf32>
    %371 = arith.mulf %366, %370 : vector<8x32xf32>
    %372 = vector.extract_strided_slice %270 {offsets = [40, 0], sizes = [8, 128], strides = [1, 1]} : vector<64x128xf32> to vector<8x128xf32>
    %373 = arith.truncf %371 : vector<8x32xf32> to vector<8x32xbf16>
    %cst_84 = arith.constant dense<0.000000e+00> : vector<8x128xf32>
    %374 = tpu.matmul %373, %271, %cst_84 {dimension_numbers = #tpu.dot_dimension_numbers<[1], [0], [0], [1], [0, 0, 1, 1], [], []>} : vector<8x32xbf16>, vector<32x128xbf16>, vector<8x128xf32> -> vector<8x128xf32>
    %375 = arith.addf %372, %374 : vector<8x128xf32>
    %376 = vector.extract_strided_slice %375 {offsets = [0, 0], sizes = [8, 96], strides = [1, 1]} : vector<8x128xf32> to vector<8x96xf32>
    %377 = arith.negf %376 : vector<8x96xf32>
    %378 = math.exp %377 : vector<8x96xf32>
    %cst_85 = arith.constant 1.000000e+00 : f32
    %379 = vector.broadcast %cst_85 : f32 to vector<8x96xf32>
    %380 = arith.addf %379, %378 : vector<8x96xf32>
    %381 = arith.divf %379, %380 : vector<8x96xf32>
    %382 = vector.extract_strided_slice %375 {offsets = [0, 96], sizes = [8, 32], strides = [1, 1]} : vector<8x128xf32> to vector<8x32xf32>
    %383 = math.tanh %382 : vector<8x32xf32>
    %384 = vector.extract_strided_slice %381 {offsets = [0, 0], sizes = [8, 32], strides = [1, 1]} : vector<8x96xf32> to vector<8x32xf32>
    %385 = vector.extract_strided_slice %381 {offsets = [0, 32], sizes = [8, 32], strides = [1, 1]} : vector<8x96xf32> to vector<8x32xf32>
    %386 = vector.extract_strided_slice %381 {offsets = [0, 64], sizes = [8, 32], strides = [1, 1]} : vector<8x96xf32> to vector<8x32xf32>
    %387 = arith.mulf %385, %369 : vector<8x32xf32>
    %388 = arith.mulf %384, %383 : vector<8x32xf32>
    %389 = arith.addf %387, %388 : vector<8x32xf32>
    %390 = math.tanh %389 : vector<8x32xf32>
    %391 = arith.mulf %386, %390 : vector<8x32xf32>
    %392 = vector.extract_strided_slice %270 {offsets = [48, 0], sizes = [8, 128], strides = [1, 1]} : vector<64x128xf32> to vector<8x128xf32>
    %393 = arith.truncf %391 : vector<8x32xf32> to vector<8x32xbf16>
    %cst_86 = arith.constant dense<0.000000e+00> : vector<8x128xf32>
    %394 = tpu.matmul %393, %271, %cst_86 {dimension_numbers = #tpu.dot_dimension_numbers<[1], [0], [0], [1], [0, 0, 1, 1], [], []>} : vector<8x32xbf16>, vector<32x128xbf16>, vector<8x128xf32> -> vector<8x128xf32>
    %395 = arith.addf %392, %394 : vector<8x128xf32>
    %396 = vector.extract_strided_slice %395 {offsets = [0, 0], sizes = [8, 96], strides = [1, 1]} : vector<8x128xf32> to vector<8x96xf32>
    %397 = arith.negf %396 : vector<8x96xf32>
    %398 = math.exp %397 : vector<8x96xf32>
    %cst_87 = arith.constant 1.000000e+00 : f32
    %399 = vector.broadcast %cst_87 : f32 to vector<8x96xf32>
    %400 = arith.addf %399, %398 : vector<8x96xf32>
    %401 = arith.divf %399, %400 : vector<8x96xf32>
    %402 = vector.extract_strided_slice %395 {offsets = [0, 96], sizes = [8, 32], strides = [1, 1]} : vector<8x128xf32> to vector<8x32xf32>
    %403 = math.tanh %402 : vector<8x32xf32>
    %404 = vector.extract_strided_slice %401 {offsets = [0, 0], sizes = [8, 32], strides = [1, 1]} : vector<8x96xf32> to vector<8x32xf32>
    %405 = vector.extract_strided_slice %401 {offsets = [0, 32], sizes = [8, 32], strides = [1, 1]} : vector<8x96xf32> to vector<8x32xf32>
    %406 = vector.extract_strided_slice %401 {offsets = [0, 64], sizes = [8, 32], strides = [1, 1]} : vector<8x96xf32> to vector<8x32xf32>
    %407 = arith.mulf %405, %389 : vector<8x32xf32>
    %408 = arith.mulf %404, %403 : vector<8x32xf32>
    %409 = arith.addf %407, %408 : vector<8x32xf32>
    %410 = math.tanh %409 : vector<8x32xf32>
    %411 = arith.mulf %406, %410 : vector<8x32xf32>
    %412 = vector.extract_strided_slice %270 {offsets = [56, 0], sizes = [8, 128], strides = [1, 1]} : vector<64x128xf32> to vector<8x128xf32>
    %413 = arith.truncf %411 : vector<8x32xf32> to vector<8x32xbf16>
    %cst_88 = arith.constant dense<0.000000e+00> : vector<8x128xf32>
    %414 = tpu.matmul %413, %271, %cst_88 {dimension_numbers = #tpu.dot_dimension_numbers<[1], [0], [0], [1], [0, 0, 1, 1], [], []>} : vector<8x32xbf16>, vector<32x128xbf16>, vector<8x128xf32> -> vector<8x128xf32>
    %415 = arith.addf %412, %414 : vector<8x128xf32>
    %416 = vector.extract_strided_slice %415 {offsets = [0, 0], sizes = [8, 96], strides = [1, 1]} : vector<8x128xf32> to vector<8x96xf32>
    %417 = arith.negf %416 : vector<8x96xf32>
    %418 = math.exp %417 : vector<8x96xf32>
    %cst_89 = arith.constant 1.000000e+00 : f32
    %419 = vector.broadcast %cst_89 : f32 to vector<8x96xf32>
    %420 = arith.addf %419, %418 : vector<8x96xf32>
    %421 = arith.divf %419, %420 : vector<8x96xf32>
    %422 = vector.extract_strided_slice %415 {offsets = [0, 96], sizes = [8, 32], strides = [1, 1]} : vector<8x128xf32> to vector<8x32xf32>
    %423 = math.tanh %422 : vector<8x32xf32>
    %424 = vector.extract_strided_slice %421 {offsets = [0, 0], sizes = [8, 32], strides = [1, 1]} : vector<8x96xf32> to vector<8x32xf32>
    %425 = vector.extract_strided_slice %421 {offsets = [0, 32], sizes = [8, 32], strides = [1, 1]} : vector<8x96xf32> to vector<8x32xf32>
    %426 = vector.extract_strided_slice %421 {offsets = [0, 64], sizes = [8, 32], strides = [1, 1]} : vector<8x96xf32> to vector<8x32xf32>
    %427 = arith.mulf %425, %409 : vector<8x32xf32>
    %428 = arith.mulf %424, %423 : vector<8x32xf32>
    %429 = arith.addf %427, %428 : vector<8x32xf32>
    %430 = math.tanh %429 : vector<8x32xf32>
    %431 = arith.mulf %426, %430 : vector<8x32xf32>
    %c0_90 = arith.constant 0 : index
    %c0_91 = arith.constant 0 : index
    %432 = vector.load %arg9[%c0_90, %c0_91] : memref<64x8xf32, #tpu.memory_space<vmem>>, vector<32x8xf32>
    %cst_92 = arith.constant dense<0.000000e+00> : vector<8x8xf32>
    %433 = tpu.matmul %431, %432, %cst_92 {dimension_numbers = #tpu.dot_dimension_numbers<[1], [0], [0], [1], [0, 0, 1, 1], [], []>} : vector<8x32xf32>, vector<32x8xf32>, vector<8x8xf32> -> vector<8x8xf32>
    %434 = arith.addf %265, %433 : vector<8x8xf32>
    %c0_93 = arith.constant 0 : index
    %c0_94 = arith.constant 0 : index
    %435 = vector.load %arg11[%c0_93, %c0_94] : memref<8x8xf32, #tpu.memory_space<vmem>>, vector<8x8xf32>
    tpu.vector_store %arg11[%c0_93, %c0_94], %434 {strides = array<i32>} : memref<8x8xf32, #tpu.memory_space<vmem>>, vector<8x8xf32>,
    return
  }
}

</mosaic_0001>

<bundles_post_ra>
// kernel: tpu_custom_call.1
= control target key start
LH: loop header
LB: loop body
LE: loop exit
PB: predicated region body
PF: predicated region fallthrough
CT: control target
= control target key end

     0   :  { %16 = vsyncpa [#allocation4], 0  ;;  %s3150_s0 = inlined_call_operand.vmem [shape: bf16[64,32], index: 0, kind: input, shape index: {}]   ;;  %s3151_s1 = inlined_call_operand.vmem [shape: bf16[32,256], index: 1, kind: input, shape index: {}]   ;;  %s3152_s2 = inlined_call_operand.vmem [shape: bf16[64,256], index: 2, kind: input, shape index: {}]   ;;  %s3153_s3 = inlined_call_operand.vmem [shape: f32[1,256], index: 3, kind: input, shape index: {}]   ;;  %s3154_s4 = inlined_call_operand.vmem [shape: bf16[64,128], index: 4, kind: input, shape index: {}]   ;;  %s3155_s5 = inlined_call_operand.hbm [shape: bf16[32,128], index: 5, kind: input, shape index: {}]   ;;  %s3156_s6 = inlined_call_operand.vmem [shape: f32[1,128], index: 6, kind: input, shape index: {}]   ;;  %s3157_s7 = inlined_call_operand.hbm [shape: bf16[64,128], index: 7, kind: input, shape index: {}]   ;;  %s3158_s8 = inlined_call_operand.vmem [shape: f32[1,128], index: 8, kind: input, shape index: {}]   ;;  %s3159_s9 = inlined_call_operand.vmem [shape: f32[64,8], index: 9, kind: input, shape index: {}]   ;;  %s3160_s10 = inlined_call_operand.vmem [shape: f32[1,8], index: 10, kind: input, shape index: {}]   ;;  %s3161_s11 = inlined_call_operand.hbm [shape: f32[8,8], index: 11, kind: output, shape index: {}]  }
   0x1   :  { %17 = vsyncpa [#allocation7], 0 }
   0x2   :  { %18 = vsyncpa [#allocation5], 0  ;;  %s2488_s17 = smov [#allocation3]   ;;  %s2416_s21 = scalar_lea.hbm %s3155_s5, 256 }
   0x3   :  { %s34_s18 = sshll.u32 %s2488_s17, 4  ;;  %p2417_p0 = scmp.ne.s32.totalorder %s3155_s5, %s2416_s21  ;;  %s35_s18 = int_to_ptr.vmem [resolvable:$true] %s34_s18 }
   0x4   :  { %p2420_p1 = scmp.lt.u32.totalorder %s2416_s21, %s3155_s5 }
   0x6   :  { %p2422_p2 = pnand %p2420_p1, %p2417_p0 }
   0x8   :  { %2425 = shalt.err (!%p2422_p2)
}
   0x9   :  { %s2426_s26 = scalar_lea.vmem %s35_s18, 256  ;;  %p2431_p4 = scmp.lt.s32.totalorder %s35_s18, %s35_s18 }
   0xa   :  { %p2427_p3 = scmp.ne.s32.totalorder %s35_s18, %s2426_s26  ;;  %p2432_p5 = scmp.lt.s32.totalorder %s2426_s26, %s2426_s26 }
   0xc   :  { %p2433_p6 = por %p2432_p5, %p2431_p4 }
   0xe   :  { %p2434_p7 = pnand %p2433_p6, %p2427_p3 }
  0x10   :  { %2437 = shalt.err (!%p2434_p7)
}
  0x11   :  { %s2489_s27 = smov 64   ;;  %s2490_s28 = smov 4  }
  0x12   :  { %40 = dma.hbm_to_vmem [thread:$0]  %s3155_s5, 256, %s35_s18, [#allocation4], %s2489_s27, %s2489_s27, %s2490_s28  }
  0x13   :  { %s2491_s12 = smov [#allocation6]   ;;  %s2438_s16 = scalar_lea.hbm %s3157_s7, 512 }
  0x14   :  { %s48_s13 = sshll.u32 %s2491_s12, 4  ;;  %p2439_p8 = scmp.ne.s32.totalorder %s3157_s7, %s2438_s16  ;;  %s49_s13 = int_to_ptr.vmem [resolvable:$true] %s48_s13 }
  0x15   :  { %p2442_p9 = scmp.lt.u32.totalorder %s2438_s16, %s3157_s7 }
  0x17   :  { %p2444_p10 = pnand %p2442_p9, %p2439_p8 }
  0x19   :  { %2447 = shalt.err (!%p2444_p10)
}
  0x1a   :  { %s2448_s22 = scalar_lea.vmem %s49_s13, 512  ;;  %p2453_p12 = scmp.lt.s32.totalorder %s49_s13, %s49_s13 }
  0x1b   :  { %p2449_p11 = scmp.ne.s32.totalorder %s49_s13, %s2448_s22  ;;  %p2454_p13 = scmp.lt.s32.totalorder %s2448_s22, %s2448_s22 }
  0x1d   :  { %p2455_p0 = por %p2454_p13, %p2453_p12 }
  0x1f   :  { %p2456_p1 = pnand %p2455_p0, %p2449_p11 }
  0x21   :  { %2459 = shalt.err (!%p2456_p1)
}
  0x22   :  { %54 = dma.hbm_to_vmem [thread:$0]  %s3157_s7, 512, %s49_s13, [#allocation7], %s2489_s27, %s2489_s27, %s2490_s28  }
  0x23   :  { %2482 = dma.done.wait [#allocation4], 256  }
  0x24   :  { %2483 = vsyncadd [#allocation4], 4294967040 }
  0x25   :  { %2484 = dma.done.wait [#allocation7], 512  }
  0x26   :  { %2485 = vsyncadd [#allocation7], 4294966784  ;;  %v2492_v0 = vmov 0   ;;  %v2216_v1 = vld [vmem:[%s3151_s1 + $0x4] ss:$8 sps:$4 sm:$0xff]   ;;  %vm132_vm0 = vcmask 261120   ;;  %v82_v17 = vlaneseq }
  0x27   :  { %177 = vmatprep.mubr.bf16.mxu0 %v2492_v0  ;;  %333 = vmatprep.mubr.bf16.mxu1 %v2492_v0  ;;  %v2218_v2 = vld [vmem:[%s3151_s1] ss:$8 sps:$4 sm:$0xff]   ;;  %v2219_v3 = vld [vmem:[%s3151_s1 + $0x14] ss:$8 sps:$4 sm:$0xff]   ;;  %v2221_v4 = vld [vmem:[%s3151_s1 + $0x10] ss:$8 sps:$4 sm:$0xff]  }
  0x28   :  { %145 = vmatprep.subr.bf16.mxu0 %v2216_v1  ;;  %v2222_v5 = vld [vmem:[%s3150_s0] sm:$0xff]   ;;  %v2616_v8 = vld [vmem:[%s3152_s2 + $0x14] ss:$8 sps:$4 sm:$0xff]   ;;  %v2623_v9 = vld [vmem:[%s3152_s2 + $0x10] ss:$8 sps:$4 sm:$0xff]   ;;  %v83_v18 = vshrl.u32 %v82_v17, 7 }
  0x29   :  { %146 = vmatpush1.bf16.msra.mxu0 %v2218_v2  ;;  %v2606_v6 = vld [vmem:[%s3152_s2 + $0x4] ss:$8 sps:$4 sm:$0xff]   ;;  %v2611_v7 = vld [vmem:[%s3152_s2] ss:$8 sps:$4 sm:$0xff]   ;;  %v2647_v13 = vld [vmem:[%s3152_s2 + $0x34] ss:$8 sps:$4 sm:$0xff]  }
  0x2a   :  { %147 = vmatprep.subr.bf16.mxu0 %v2219_v3  ;;  %301 = vmatprep.subr.bf16.mxu1 %v2606_v6  ;;  %v2630_v10 = vld [vmem:[%s3152_s2 + $0x24] ss:$8 sps:$4 sm:$0xff]   ;;  %v2637_v11 = vld [vmem:[%s3152_s2 + $0x20] ss:$8 sps:$4 sm:$0xff]   ;;  %v2654_v14 = vld [vmem:[%s3152_s2 + $0x30] ss:$8 sps:$4 sm:$0xff]  }
  0x2b   :  { %302 = vmatpush1.bf16.msra.mxu1 %v2611_v7  ;;  %v2223_v12 = vld [vmem:[%s3150_s0 + $0x8] sm:$0xff]   ;;  %v2230_v15 = vld [vmem:[%s3150_s0 + $0x10] sm:$0xff]   ;;  %v2237_v16 = vld [vmem:[%s3150_s0 + $0x18] sm:$0xff]   ;;  %v84_v19 = vsub.s32 0, %v83_v18  ;;  %v88_v21 = vsub.s32 1, %v83_v18  ;;  %v227_v30 = vand.u32 127, %v82_v17 }
  0x2c   :  { %303 = vmatprep.subr.bf16.mxu1 %v2616_v8  ;;  %v80_v20 = vld [vmem:[%s3153_s3] sm:$0x3]  ;;  %vm375_vm3 = vcmask 523520   ;;  %vm297_vm4 = vcmask 523264   ;;  %v2238_v50 = vld [vmem:[#allocation6] sm:$0xff]   ;;  %vm2494_vm5 = vmmov 0  }
  0x2d   :  { %148 = vmatpush1.bf16.msra.mxu0 %v2221_v4  ;;  %v85_v23 = vrot.slane %v80_v20, %v84_v19  ;;  %v89_v25 = vrot.slane %v80_v20, %v88_v21  ;;  %v228_v34 = vadd.s32 128, %v227_v30  ;;  %v233_v40 = vand.u32 63, %v227_v30  ;;  %s2495_s5 = smov 32  }
  0x2e   :  { %464 = vmatprep.subr.bf16.mxu0 %v2606_v6  ;;  %vm1933_vm6 = vcmask 64512  }
  0x2f   :  { %304 = vmatpush1.bf16.msra.mxu1 %v2623_v9  ;;  %v240_v42 = vand.u32 63, %v228_v34  ;;  %vm2703_vm1 = vcmp.lt.s32.totalorder %v233_v40, 32 }
  0x30   :  { %1959 = vmatmul.mubr.msk.bf16.vlgmr.msra.gmra.mrb[0].mxu0 %vm132_vm0, %v2222_v5  ;;  %305 = vmatprep.subr.bf16.mxu1 %v2630_v10 }
  0x31   :  { %187 = vmatprep.mubr.bf16.mxu0 %v2492_v0  ;;  %465 = vmatpush1.bf16.msra.mxu0 %v2611_v7  ;;  %vm2709_vm2 = vcmp.lt.s32.totalorder %v240_v42, 32 }
  0x32   :  { %466 = vmatprep.subr.bf16.mxu0 %v2616_v8 }
  0x33   :  { %306 = vmatpush1.bf16.msra.mxu1 %v2637_v11 }
  0x34   :  { %307 = vmatprep.subr.bf16.mxu1 %v2647_v13 }
  0x35   :  { %467 = vmatpush1.bf16.msra.mxu0 %v2623_v9 }
  0x36   :  { %468 = vmatprep.subr.bf16.mxu0 %v2630_v10 }
  0x37   :  { %308 = vmatpush1.bf16.msra.mxu1 %v2654_v14 }
  0x38   :  { %1960 = vmatmul.mubr.msk.bf16.gmra.mrb[4].mxu0 %vm132_vm0, %v2223_v12  ;;  %383 = vmatprep.subr.bf16.mxu1 %v2606_v6 }
  0x39   :  { %197 = vmatprep.mubr.bf16.mxu0 %v2492_v0  ;;  %469 = vmatpush1.bf16.msra.mxu0 %v2637_v11 }
  0x3a   :  { %470 = vmatprep.subr.bf16.mxu0 %v2647_v13  ;;  %334 = vmatmul.mubr.bf16.vlgmr.msra.gmra.mrb[0].mxu1 %v2492_v0 }
  0x3b   :  { %384 = vmatpush1.bf16.msra.mxu1 %v2611_v7  ;;  %415 = vmatprep.mubr.bf16.mxu1 %v2492_v0 }
  0x3c   :  { %385 = vmatprep.subr.bf16.mxu1 %v2616_v8 }
  0x3d   :  { %471 = vmatpush1.bf16.msra.mxu0 %v2654_v14 }
  0x3e   :  { %626 = vmatprep.subr.bf16.mxu0 %v2606_v6 }
  0x3f   :  { %386 = vmatpush1.bf16.msra.mxu1 %v2623_v9 }
  0x40   :  { %1961 = vmatmul.mubr.msk.bf16.gmra.mrb[8].mxu0 %vm132_vm0, %v2230_v15  ;;  %387 = vmatprep.subr.bf16.mxu1 %v2630_v10 }
  0x41   :  { %207 = vmatprep.mubr.bf16.mxu0 %v2492_v0 }
  0x43   :  { %388 = vmatpush1.bf16.msra.mxu1 %v2637_v11 }
  0x44   :  { %389 = vmatprep.subr.bf16.mxu1 %v2647_v13 }
  0x47   :  { %390 = vmatpush1.bf16.msra.mxu1 %v2654_v14 }
  0x48   :  { %1962 = vmatmul.mubr.msk.bf16.gmra.mrb[12].mxu0 %vm132_vm0, %v2237_v16  ;;  %545 = vmatprep.subr.bf16.mxu1 %v2606_v6 }
  0x49   :  { %496 = vmatprep.mubr.bf16.mxu0 %v2492_v0 }
 0x103   :  { %v179_v22 = vpop.f32.mrb[0].mxu0 }
 0x104   :  { %v181_v24 = vpop.f32.mrb[1].mxu0  ;;  %v2755_v12 = vadd.f32 %v179_v22, %v85_v23 }
 0x105   :  { %v183_v26 = vpop.f32.mrb[2].mxu0  ;;  %v2767_v19 = vadd.f32 %v181_v24, %v89_v25 }
 0x106   :  { %v2691_v27 = vadd.f32 %v183_v26, %v85_v23  ;;  %v185_v28 = vpop.f32.mrb[3].mxu0 }
 0x107   :  { %v2693_v29 = vadd.f32 %v185_v28, %v89_v25 }
 0x10b   :  { %v189_v31 = vpop.f32.mrb[4].mxu0 }
 0x10c   :  { %v2695_v32 = vadd.f32 %v189_v31, %v85_v23  ;;  %v191_v33 = vpop.f32.mrb[5].mxu0 }
 0x10d   :  { %v2697_v35 = vadd.f32 %v191_v33, %v89_v25  ;;  %v193_v36 = vpop.f32.mrb[6].mxu0  ;;  %v335_v41 = vpop.f32.mrb[0].mxu1 }
 0x10e   :  { %v2699_v37 = vadd.f32 %v193_v36, %v85_v23  ;;  %v195_v38 = vpop.f32.mrb[7].mxu0  ;;  %v337_v43 = vpop.f32.mrb[1].mxu1 }
 0x10f   :  { %v2701_v39 = vadd.f32 %v195_v38, %v89_v25  ;;  %v339_v44 = vpop.f32.mrb[2].mxu1 }
 0x110   :  { %v340_v47 = vpop.f32.mrb[3].mxu1 }
 0x113   :  { %v199_v45 = vpop.f32.mrb[8].mxu0 }
 0x114   :  { %v2707_v48 = vadd.f32 %v199_v45, %v85_v23  ;;  %v201_v49 = vpop.f32.mrb[9].mxu0 }
 0x115   :  { %v2713_v51 = vadd.f32 %v201_v49, %v89_v25  ;;  %v203_v52 = vpop.f32.mrb[10].mxu0 }
 0x116   :  { %v2715_v53 = vadd.f32 %v203_v52, %v85_v23  ;;  %v205_v54 = vpop.f32.mrb[11].mxu0  ;;  %v539_v55 = vsel %vm2703_vm1, %v2699_v37, %v2707_v48  ;;  %v620_v56 = vsel %vm2703_vm1, %v2707_v48, %v2699_v37 }
 0x117   :  { %v2725_v57 = vadd.f32 %v205_v54, %v89_v25  ;;  %v540_v58 = vsel %vm2709_vm2, %v2701_v39, %v2713_v51  ;;  %v621_v59 = vsel %vm2709_vm2, %v2713_v51, %v2701_v39 }
 0x118   :  { %v458_v60 = vsel %vm2703_vm1, %v2695_v32, %v2715_v53  ;;  %v701_v61 = vsel %vm2703_vm1, %v2715_v53, %v2695_v32 }
 0x119   :  { %v459_v62 = vsel %vm2709_vm2, %v2697_v35, %v2725_v57  ;;  %v702_v63 = vsel %vm2709_vm2, %v2725_v57, %v2697_v35 }
 0x11b   :  { %v209_v1 = vpop.f32.mrb[12].mxu0 }
 0x11c   :  { %v2751_v2 = vadd.f32 %v209_v1, %v85_v23  ;;  %v211_v3 = vpop.f32.mrb[13].mxu0 }
 0x11d   :  { %v2753_v4 = vadd.f32 %v211_v3, %v89_v25  ;;  %v213_v5 = vpop.f32.mrb[14].mxu0 }
 0x11e   :  { %v2757_v15 = vadd.f32 %v213_v5, %v85_v23  ;;  %v215_v16 = vpop.f32.mrb[15].mxu0  ;;  %v377_v17 = vsel %vm2703_vm1, %v2691_v27, %v2751_v2  ;;  %v782_v18 = vsel %vm2703_vm1, %v2751_v2, %v2691_v27 }
 0x11f   :  { %v2769_v20 = vadd.f32 %v215_v16, %v89_v25  ;;  %v378_v21 = vsel %vm2709_vm2, %v2693_v29, %v2753_v4  ;;  %v783_v22 = vsel %vm2709_vm2, %v2753_v4, %v2693_v29 }
 0x120   :  { %v255_v23 = vsel %vm2703_vm1, %v2755_v12, %v2757_v15  ;;  %v863_v24 = vsel %vm2703_vm1, %v2757_v15, %v2755_v12 }
 0x121   :  { %v342_v25 = vadd.f32 %v335_v41, %v255_v23  ;;  %v256_v26 = vsel %vm2709_vm2, %v2767_v19, %v2769_v20  ;;  %v864_v28 = vsel %vm2709_vm2, %v2769_v20, %v2767_v19 }
 0x122   :  { %v343_v30 = vadd.f32 %v337_v43, %v256_v26 }
 0x123   :  { %v1971_v33 = vmul.f32 -1.442695, %v342_v25 }
 0x124   :  { %2248 = vtanh.f32 %v343_v30  ;;  %v1972_v43 = vmul.f32 -1.442695, %v343_v30 }
 0x125   :  { %2250 = vpow2.f32 %v1971_v33 }
 0x12e   :  { %v2249_v31 = vpop.eup %2248 }
 0x12f   :  { %359 = vrot.lane.b32.xlu0 %v2249_v31, %s2489_s27  ;;  %v2251_v34 = vpop.eup %2250 }
 0x130   :  { %v350_v36 = vadd.f32 1.0, %v2251_v34 }
 0x132   :  { %2252 = vrcp.f32 %v350_v36 }
 0x13c   :  { %v2253_v38 = vpop.eup %2252 }
 0x13d   :  { %v357_v42 = vmul.f32 0.0, %v2253_v38 }
 0x1a1   :  { %v360_v40 = vpop.permute.xlu0 %359 }
 0x1a2   :  { %v362_v41 = vmul.f32 %v2253_v38, %v360_v40 }
 0x1a4   :  { %364 = vrot.lane.b32.xlu0 %v362_v41, %s2489_s27 }
 0x216   :  { %v365_v44 = vpop.permute.xlu0 %364 }
 0x217   :  { %v367_v45 = vadd.f32 %v365_v44, %v357_v42 }
 0x219   :  { %2254 = vtanh.f32 %v367_v45 }
 0x21a   :  { %2256 = vpow2.f32 %v1972_v43 }
 0x223   :  { %v2255_v47 = vpop.eup %2254 }
 0x224   :  { %370 = vrot.lane.b32.xlu1 %v2255_v47, %s2489_s27  ;;  %v2257_v49 = vpop.eup %2256 }
 0x225   :  { %v351_v52 = vadd.f32 1.0, %v2257_v49 }
 0x227   :  { %2258 = vrcp.f32 %v351_v52 }
 0x231   :  { %v2259_v54 = vpop.eup %2258 }
 0x296   :  { %v371_v1 = vpop.permute.xlu1 %370 }
 0x297   :  { %v373_v3 = vmul.f32 %v2259_v54, %v371_v1 }
 0x299   :  { %374 = vst.msk [vmem:[#allocation2] sm:$0xff] %vm132_vm0, %v373_v3  ;;  %v379_v5 = vpack.c.bf16 %v373_v3, %v373_v3 }
 0x29a   :  { %376 = vst.msk [vmem:[#allocation2 + $0x38] sm:$0xff] %vm375_vm3, %v373_v3 }
 0x29b   :  { %1973 = vmatmul.mubr.msk.bf16.vlgmr.msra.gmra.mrb[4].mxu1 %vm297_vm4, %v379_v5 }
 0x29c   :  { %546 = vmatpush1.bf16.msra.mxu1 %v2611_v7  ;;  %577 = vmatprep.mubr.bf16.mxu1 %v2492_v0 }
 0x29d   :  { %547 = vmatprep.subr.bf16.mxu1 %v2616_v8 }
 0x2a0   :  { %548 = vmatpush1.bf16.msra.mxu1 %v2623_v9 }
 0x2a1   :  { %549 = vmatprep.subr.bf16.mxu1 %v2630_v10 }
 0x2a4   :  { %550 = vmatpush1.bf16.msra.mxu1 %v2637_v11 }
 0x2a5   :  { %551 = vmatprep.subr.bf16.mxu1 %v2647_v13 }
 0x2a8   :  { %552 = vmatpush1.bf16.msra.mxu1 %v2654_v14 }
 0x2a9   :  { %707 = vmatprep.subr.bf16.mxu1 %v2606_v6 }
 0x36e   :  { %v417_v16 = vpop.f32.mrb[4].mxu1 }
 0x36f   :  { %v424_v23 = vadd.f32 %v417_v16, %v377_v17  ;;  %v419_v25 = vpop.f32.mrb[5].mxu1 }
 0x370   :  { %v425_v26 = vadd.f32 %v419_v25, %v378_v21  ;;  %v421_v30 = vpop.f32.mrb[6].mxu1 }
 0x371   :  { %v422_v31 = vpop.f32.mrb[7].mxu1  ;;  %v1974_v34 = vmul.f32 -1.442695, %v424_v23 }
 0x372   :  { %2260 = vtanh.f32 %v425_v26  ;;  %v1975_v43 = vmul.f32 -1.442695, %v425_v26 }
 0x373   :  { %2262 = vpow2.f32 %v1974_v34 }
 0x37c   :  { %v2261_v33 = vpop.eup %2260 }
 0x37d   :  { %441 = vrot.lane.b32.xlu1 %v2261_v33, %s2489_s27  ;;  %v2263_v36 = vpop.eup %2262 }
 0x37e   :  { %v432_v38 = vadd.f32 1.0, %v2263_v36 }
 0x380   :  { %2264 = vrcp.f32 %v432_v38 }
 0x38a   :  { %v2265_v40 = vpop.eup %2264 }
 0x38b   :  { %v439_v44 = vmul.f32 %v2265_v40, %v367_v45 }
 0x3ef   :  { %v442_v41 = vpop.permute.xlu1 %441 }
 0x3f0   :  { %v444_v42 = vmul.f32 %v2265_v40, %v442_v41 }
 0x3f2   :  { %446 = vrot.lane.b32.xlu0 %v444_v42, %s2489_s27 }
 0x464   :  { %v447_v17 = vpop.permute.xlu0 %446 }
 0x465   :  { %v449_v47 = vadd.f32 %v447_v17, %v439_v44 }
 0x467   :  { %2266 = vtanh.f32 %v449_v47 }
 0x468   :  { %2268 = vpow2.f32 %v1975_v43 }
 0x471   :  { %v2267_v21 = vpop.eup %2266 }
 0x472   :  { %452 = vrot.lane.b32.xlu1 %v2267_v21, %s2489_s27  ;;  %v2269_v49 = vpop.eup %2268 }
 0x473   :  { %v433_v52 = vadd.f32 1.0, %v2269_v49 }
 0x475   :  { %2270 = vrcp.f32 %v433_v52 }
 0x47f   :  { %v2271_v54 = vpop.eup %2270 }
 0x4e4   :  { %v453_v1 = vpop.permute.xlu1 %452 }
 0x4e5   :  { %v455_v3 = vmul.f32 %v2271_v54, %v453_v1 }
 0x4e7   :  { %456 = vst.msk [vmem:[#allocation2 + $0x8] sm:$0xff] %vm132_vm0, %v455_v3  ;;  %v460_v5 = vpack.c.bf16 %v455_v3, %v455_v3 }
 0x4e8   :  { %457 = vst.msk [vmem:[#allocation2 + $0x30] sm:$0xff] %vm375_vm3, %v455_v3 }
 0x4e9   :  { %1976 = vmatmul.mubr.msk.bf16.vlgmr.msra.gmra.mrb[16].mxu0 %vm297_vm4, %v460_v5 }
 0x4ea   :  { %627 = vmatpush1.bf16.msra.mxu0 %v2611_v7  ;;  %658 = vmatprep.mubr.bf16.mxu0 %v2492_v0 }
 0x4eb   :  { %628 = vmatprep.subr.bf16.mxu0 %v2616_v8 }
 0x4ee   :  { %629 = vmatpush1.bf16.msra.mxu0 %v2623_v9 }
 0x4ef   :  { %630 = vmatprep.subr.bf16.mxu0 %v2630_v10 }
 0x4f2   :  { %631 = vmatpush1.bf16.msra.mxu0 %v2637_v11 }
 0x4f3   :  { %632 = vmatprep.subr.bf16.mxu0 %v2647_v13 }
 0x4f6   :  { %633 = vmatpush1.bf16.msra.mxu0 %v2654_v14 }
 0x4f7   :  { %788 = vmatprep.subr.bf16.mxu0 %v2606_v6 }
 0x5bc   :  { %v498_v45 = vpop.f32.mrb[16].mxu0 }
 0x5bd   :  { %v505_v16 = vadd.f32 %v498_v45, %v458_v60  ;;  %v500_v23 = vpop.f32.mrb[17].mxu0 }
 0x5be   :  { %v506_v25 = vadd.f32 %v500_v23, %v459_v62  ;;  %v502_v26 = vpop.f32.mrb[18].mxu0 }
 0x5bf   :  { %v503_v30 = vpop.f32.mrb[19].mxu0  ;;  %v1977_v33 = vmul.f32 -1.442695, %v505_v16 }
 0x5c0   :  { %2272 = vtanh.f32 %v506_v25  ;;  %v1978_v17 = vmul.f32 -1.442695, %v506_v25 }
 0x5c1   :  { %2274 = vpow2.f32 %v1977_v33 }
 0x5ca   :  { %v2273_v31 = vpop.eup %2272 }
 0x5cb   :  { %522 = vrot.lane.b32.xlu0 %v2273_v31, %s2489_s27  ;;  %v2275_v34 = vpop.eup %2274 }
 0x5cc   :  { %v513_v36 = vadd.f32 1.0, %v2275_v34 }
 0x5ce   :  { %2276 = vrcp.f32 %v513_v36 }
 0x5d8   :  { %v2277_v38 = vpop.eup %2276 }
 0x5d9   :  { %v520_v41 = vmul.f32 %v2277_v38, %v449_v47 }
 0x63d   :  { %v523_v60 = vpop.permute.xlu0 %522 }
 0x63e   :  { %v525_v40 = vmul.f32 %v2277_v38, %v523_v60 }
 0x640   :  { %527 = vrot.lane.b32.xlu1 %v525_v40, %s2489_s27 }
 0x6b2   :  { %v528_v42 = vpop.permute.xlu1 %527 }
 0x6b3   :  { %v530_v44 = vadd.f32 %v528_v42, %v520_v41 }
 0x6b5   :  { %2278 = vtanh.f32 %v530_v44 }
 0x6b6   :  { %2280 = vpow2.f32 %v1978_v17 }
 0x6bf   :  { %v2279_v62 = vpop.eup %2278 }
 0x6c0   :  { %533 = vrot.lane.b32.xlu0 %v2279_v62, %s2489_s27  ;;  %v2281_v21 = vpop.eup %2280 }
 0x6c1   :  { %v514_v43 = vadd.f32 1.0, %v2281_v21 }
 0x6c3   :  { %2282 = vrcp.f32 %v514_v43 }
 0x6cd   :  { %v2283_v49 = vpop.eup %2282 }
 0x732   :  { %v534_v52 = vpop.permute.xlu0 %533 }
 0x733   :  { %v536_v54 = vmul.f32 %v2283_v49, %v534_v52 }
 0x735   :  { %537 = vst.msk [vmem:[#allocation2 + $0x10] sm:$0xff] %vm132_vm0, %v536_v54  ;;  %v541_v1 = vpack.c.bf16 %v536_v54, %v536_v54 }
 0x736   :  { %538 = vst.msk [vmem:[#allocation2 + $0x28] sm:$0xff] %vm375_vm3, %v536_v54 }
 0x737   :  { %1979 = vmatmul.mubr.msk.bf16.vlgmr.msra.gmra.mrb[8].mxu1 %vm297_vm4, %v541_v1 }
 0x738   :  { %708 = vmatpush1.bf16.msra.mxu1 %v2611_v7  ;;  %739 = vmatprep.mubr.bf16.mxu1 %v2492_v0 }
 0x739   :  { %709 = vmatprep.subr.bf16.mxu1 %v2616_v8 }
 0x73c   :  { %710 = vmatpush1.bf16.msra.mxu1 %v2623_v9 }
 0x73d   :  { %711 = vmatprep.subr.bf16.mxu1 %v2630_v10 }
 0x740   :  { %712 = vmatpush1.bf16.msra.mxu1 %v2637_v11 }
 0x741   :  { %713 = vmatprep.subr.bf16.mxu1 %v2647_v13 }
 0x744   :  { %714 = vmatpush1.bf16.msra.mxu1 %v2654_v14 }
 0x745   :  { %869 = vmatprep.subr.bf16.mxu1 %v2606_v6 }
 0x80a   :  { %v579_v47 = vpop.f32.mrb[8].mxu1 }
 0x80b   :  { %v586_v3 = vadd.f32 %v579_v47, %v539_v55  ;;  %v581_v5 = vpop.f32.mrb[9].mxu1 }
 0x80c   :  { %v587_v45 = vadd.f32 %v581_v5, %v540_v58  ;;  %v583_v16 = vpop.f32.mrb[10].mxu1 }
 0x80d   :  { %v584_v23 = vpop.f32.mrb[11].mxu1  ;;  %v1980_v6 = vmul.f32 -1.442695, %v586_v3 }
 0x80e   :  { %2284 = vtanh.f32 %v587_v45  ;;  %v1981_v60 = vmul.f32 -1.442695, %v587_v45 }
 0x80f   :  { %2286 = vpow2.f32 %v1980_v6 }
 0x818   :  { %v2285_v25 = vpop.eup %2284 }
 0x819   :  { %603 = vrot.lane.b32.xlu1 %v2285_v25, %s2489_s27  ;;  %v2287_v26 = vpop.eup %2286 }
 0x81a   :  { %v594_v30 = vadd.f32 1.0, %v2287_v26 }
 0x81c   :  { %2288 = vrcp.f32 %v594_v30 }
 0x826   :  { %v2289_v31 = vpop.eup %2288 }
 0x827   :  { %v601_v34 = vmul.f32 %v2289_v31, %v530_v44 }
 0x88b   :  { %v604_v55 = vpop.permute.xlu1 %603 }
 0x88c   :  { %v606_v33 = vmul.f32 %v2289_v31, %v604_v55 }
 0x88e   :  { %608 = vrot.lane.b32.xlu0 %v606_v33, %s2489_s27 }
 0x900   :  { %v609_v36 = vpop.permute.xlu0 %608 }
 0x901   :  { %v611_v38 = vadd.f32 %v609_v36, %v601_v34 }
 0x903   :  { %2290 = vtanh.f32 %v611_v38 }
 0x904   :  { %2292 = vpow2.f32 %v1981_v60 }
 0x90d   :  { %v2291_v58 = vpop.eup %2290 }
 0x90e   :  { %614 = vrot.lane.b32.xlu1 %v2291_v58, %s2489_s27  ;;  %v2293_v40 = vpop.eup %2292 }
 0x90f   :  { %v595_v41 = vadd.f32 1.0, %v2293_v40 }
 0x911   :  { %2294 = vrcp.f32 %v595_v41 }
 0x91b   :  { %v2295_v42 = vpop.eup %2294 }
 0x980   :  { %v615_v62 = vpop.permute.xlu1 %614 }
 0x981   :  { %v617_v17 = vmul.f32 %v2295_v42, %v615_v62 }
 0x983   :  { %618 = vst.msk [vmem:[#allocation2 + $0x18] sm:$0xff] %vm132_vm0, %v617_v17  ;;  %v622_v21 = vpack.c.bf16 %v617_v17, %v617_v17 }
 0x984   :  { %619 = vst.msk [vmem:[#allocation2 + $0x20] sm:$0xff] %vm375_vm3, %v617_v17 }
 0x985   :  { %1982 = vmatmul.mubr.msk.bf16.vlgmr.msra.gmra.mrb[20].mxu0 %vm297_vm4, %v622_v21 }
 0x986   :  { %789 = vmatpush1.bf16.msra.mxu0 %v2611_v7  ;;  %820 = vmatprep.mubr.bf16.mxu0 %v2492_v0 }
 0x987   :  { %790 = vmatprep.subr.bf16.mxu0 %v2616_v8 }
 0x98a   :  { %791 = vmatpush1.bf16.msra.mxu0 %v2623_v9 }
 0x98b   :  { %792 = vmatprep.subr.bf16.mxu0 %v2630_v10 }
 0x98e   :  { %793 = vmatpush1.bf16.msra.mxu0 %v2637_v11 }
 0x98f   :  { %794 = vmatprep.subr.bf16.mxu0 %v2647_v13 }
 0x992   :  { %795 = vmatpush1.bf16.msra.mxu0 %v2654_v14 }
 0xa58   :  { %v660_v44 = vpop.f32.mrb[20].mxu0 }
 0xa59   :  { %v667_v43 = vadd.f32 %v660_v44, %v620_v56  ;;  %v662_v49 = vpop.f32.mrb[21].mxu0 }
 0xa5a   :  { %v668_v52 = vadd.f32 %v662_v49, %v621_v59  ;;  %v664_v54 = vpop.f32.mrb[22].mxu0 }
 0xa5b   :  { %v665_v1 = vpop.f32.mrb[23].mxu0  ;;  %v1983_v3 = vmul.f32 -1.442695, %v667_v43 }
 0xa5c   :  { %2296 = vtanh.f32 %v668_v52  ;;  %v1984_v59 = vmul.f32 -1.442695, %v668_v52 }
 0xa5d   :  { %2298 = vpow2.f32 %v1983_v3 }
 0xa66   :  { %v2297_v47 = vpop.eup %2296 }
 0xa67   :  { %684 = vrot.lane.b32.xlu0 %v2297_v47, %s2489_s27  ;;  %v2299_v5 = vpop.eup %2298 }
 0xa68   :  { %v675_v45 = vadd.f32 1.0, %v2299_v5 }
 0xa6a   :  { %2300 = vrcp.f32 %v675_v45 }
 0xa74   :  { %v2301_v37 = vpop.eup %2300 }
 0xa75   :  { %v682_v16 = vmul.f32 %v2301_v37, %v611_v38 }
 0xad9   :  { %v685_v48 = vpop.permute.xlu0 %684 }
 0xada   :  { %v687_v56 = vmul.f32 %v2301_v37, %v685_v48 }
 0xadc   :  { %689 = vrot.lane.b32.xlu1 %v687_v56, %s2489_s27 }
 0xb4e   :  { %v690_v23 = vpop.permute.xlu1 %689 }
 0xb4f   :  { %v692_v39 = vadd.f32 %v690_v23, %v682_v16 }
 0xb51   :  { %2302 = vtanh.f32 %v692_v39 }
 0xb52   :  { %2304 = vpow2.f32 %v1984_v59 }
 0xb5b   :  { %v2303_v51 = vpop.eup %2302 }
 0xb5c   :  { %695 = vrot.lane.b32.xlu0 %v2303_v51, %s2489_s27  ;;  %v2305_v25 = vpop.eup %2304 }
 0xb5d   :  { %v676_v6 = vadd.f32 1.0, %v2305_v25 }
 0xb5f   :  { %2306 = vrcp.f32 %v676_v6 }
 0xb69   :  { %v2307_v26 = vpop.eup %2306 }
 0xbce   :  { %v696_v30 = vpop.permute.xlu0 %695 }
 0xbcf   :  { %v698_v31 = vmul.f32 %v2307_v26, %v696_v30 }
 0xbd1   :  { %699 = vst.msk [vmem:[#allocation2 + $0x20] sm:$0xff] %vm132_vm0, %v698_v31  ;;  %v703_v55 = vpack.c.bf16 %v698_v31, %v698_v31 }
 0xbd2   :  { %700 = vst.msk [vmem:[#allocation2 + $0x18] sm:$0xff] %vm375_vm3, %v698_v31 }
 0xbd3   :  { %1985 = vmatmul.mubr.msk.bf16.vlgmr.msra.gmra.mrb[12].mxu1 %vm297_vm4, %v703_v55 }
 0xbd4   :  { %870 = vmatpush1.bf16.msra.mxu1 %v2611_v7  ;;  %901 = vmatprep.mubr.bf16.mxu1 %v2492_v0 }
 0xbd5   :  { %871 = vmatprep.subr.bf16.mxu1 %v2616_v8 }
 0xbd8   :  { %872 = vmatpush1.bf16.msra.mxu1 %v2623_v9 }
 0xbd9   :  { %873 = vmatprep.subr.bf16.mxu1 %v2630_v10 }
 0xbdc   :  { %874 = vmatpush1.bf16.msra.mxu1 %v2637_v11 }
 0xbdd   :  { %875 = vmatprep.subr.bf16.mxu1 %v2647_v13 }
 0xbe0   :  { %876 = vmatpush1.bf16.msra.mxu1 %v2654_v14 }
 0xca6   :  { %v741_v33 = vpop.f32.mrb[12].mxu1 }
 0xca7   :  { %v748_v7 = vadd.f32 %v741_v33, %v701_v61  ;;  %v743_v34 = vpop.f32.mrb[13].mxu1 }
 0xca8   :  { %v749_v8 = vadd.f32 %v743_v34, %v702_v63  ;;  %v745_v9 = vpop.f32.mrb[14].mxu1  ;;  %v2493_v34 = vmov 0.0  }
 0xca9   :  { %v746_v10 = vpop.f32.mrb[15].mxu1  ;;  %v1986_v13 = vmul.f32 -1.442695, %v748_v7  ;;  %2077 = vmatprep.subr.bf16.mxu0 %v2493_v34  ;;  %v2240_v9 = vld [vmem:[#allocation6 + $0x10] sm:$0xff]  }
 0xcaa   :  { %2308 = vtanh.f32 %v749_v8  ;;  %v1987_v63 = vmul.f32 -1.442695, %v749_v8  ;;  %v2239_v8 = vld [vmem:[#allocation6 + $0x8] sm:$0xff]   ;;  %v2241_v10 = vld [vmem:[#allocation6 + $0x18] sm:$0xff]  }
 0xcab   :  { %2310 = vpow2.f32 %v1986_v13 }
 0xcb4   :  { %v2309_v11 = vpop.eup %2308 }
 0xcb5   :  { %765 = vrot.lane.b32.xlu1 %v2309_v11, %s2489_s27  ;;  %v2311_v14 = vpop.eup %2310  ;;  %v2242_v11 = vld [vmem:[%s3154_s4] sm:$0xff]  }
 0xcb6   :  { %v756_v36 = vadd.f32 1.0, %v2311_v14 }
 0xcb8   :  { %2312 = vrcp.f32 %v756_v36 }
 0xcc2   :  { %v2313_v32 = vpop.eup %2312 }
 0xcc3   :  { %v763_v38 = vmul.f32 %v2313_v32, %v692_v39 }
 0xd27   :  { %v766_v53 = vpop.permute.xlu1 %765 }
 0xd28   :  { %v768_v61 = vmul.f32 %v2313_v32, %v766_v53 }
 0xd2a   :  { %770 = vrot.lane.b32.xlu0 %v768_v61, %s2489_s27 }
 0xd9c   :  { %v771_v58 = vpop.permute.xlu0 %770 }
 0xd9d   :  { %v773_v35 = vadd.f32 %v771_v58, %v763_v38 }
 0xd9f   :  { %2314 = vtanh.f32 %v773_v35 }
 0xda0   :  { %2316 = vpow2.f32 %v1987_v63 }
 0xda9   :  { %v2315_v57 = vpop.eup %2314 }
 0xdaa   :  { %776 = vrot.lane.b32.xlu1 %v2315_v57, %s2489_s27  ;;  %v2317_v60 = vpop.eup %2316 }
 0xdab   :  { %v757_v40 = vadd.f32 1.0, %v2317_v60 }
 0xdad   :  { %2318 = vrcp.f32 %v757_v40 }
 0xdb7   :  { %v2319_v41 = vpop.eup %2318 }
 0xe1c   :  { %v777_v42 = vpop.permute.xlu1 %776 }
 0xe1d   :  { %v779_v62 = vmul.f32 %v2319_v41, %v777_v42  ;;  %v2243_v41 = vld [vmem:[%s3154_s4 + $0x8] sm:$0xff]  }
 0xe1f   :  { %780 = vst.msk [vmem:[#allocation2 + $0x28] sm:$0xff] %vm132_vm0, %v779_v62  ;;  %v784_v17 = vpack.c.bf16 %v779_v62, %v779_v62 }
 0xe20   :  { %781 = vst.msk [vmem:[#allocation2 + $0x10] sm:$0xff] %vm375_vm3, %v779_v62  ;;  %v2244_v62 = vld [vmem:[%s3154_s4 + $0x10] sm:$0xff]  }
 0xe21   :  { %1988 = vmatmul.mubr.msk.bf16.vlgmr.msra.gmra.mrb[24].mxu0 %vm297_vm4, %v784_v17  ;;  %v2245_v17 = vld [vmem:[%s3154_s4 + $0x18] sm:$0xff]  }
 0xe22   :  { %2078 = vmatpush3.bf16.msra.mxu0 %v2238_v50  ;;  %2085 = vmatprep.mubr.msk.bf16.mxu0 %vm2494_vm5, %v2493_v34 }
 0xe23   :  { %2079 = vmatprep.subr.bf16.mxu0 %v2493_v34 }
 0xe26   :  { %2080 = vmatpush3.bf16.msra.mxu0 %v2239_v8  ;;  %v2496_v8 = vmov 0.0|0.0  }
 0xe27   :  { %2081 = vmatprep.subr.bf16.mxu0 %v2493_v34  ;;  %2191 = vmatprep.subr.bf16.mxu1 %v2496_v8 }
 0xe2a   :  { %2082 = vmatpush3.bf16.msra.mxu0 %v2240_v9 }
 0xe2b   :  { %2083 = vmatprep.subr.bf16.mxu0 %v2493_v34 }
 0xe2e   :  { %2084 = vmatpush3.bf16.msra.mxu0 %v2241_v10  ;;  %v1067_v10 = vld [vmem:[%s3159_s9 + $0x38] sm:$0xff] }
 0xe2f   :  { %2100 = vmatprep.subr.bf16.mxu0 %v2242_v11 }
 0xef4   :  { %v822_v21 = vpop.f32.mrb[24].mxu0 }
 0xef5   :  { %v829_v44 = vadd.f32 %v822_v21, %v782_v18  ;;  %v824_v43 = vpop.f32.mrb[25].mxu0  ;;  %v946_v21 = vld [vmem:[#allocation2 + $0x10] sm:$0xff] }
 0xef6   :  { %v830_v49 = vadd.f32 %v824_v43, %v783_v22  ;;  %v826_v52 = vpop.f32.mrb[26].mxu0  ;;  %v947_v43 = vld [vmem:[#allocation2 + $0x18] sm:$0xff] }
 0xef7   :  { %v827_v54 = vpop.f32.mrb[27].mxu0  ;;  %v1989_v47 = vmul.f32 -1.442695, %v829_v44  ;;  %v949_v44 = vld [vmem:[#allocation2 + $0x28] sm:$0xff]  ;;  %v948_v52 = vld [vmem:[#allocation2 + $0x20] sm:$0xff] }
 0xef8   :  { %2320 = vtanh.f32 %v830_v49  ;;  %v1990_v22 = vmul.f32 -1.442695, %v830_v49  ;;  %v953_v49 = vpack.c.bf16 %v947_v43, %v946_v21  ;;  %v954_v54 = vpack.c.bf16 %v949_v44, %v948_v52 }
 0xef9   :  { %2322 = vpow2.f32 %v1989_v47 }
 0xf02   :  { %v2321_v1 = vpop.eup %2320 }
 0xf03   :  { %846 = vrot.lane.b32.xlu0 %v2321_v1, %s2489_s27  ;;  %v2323_v3 = vpop.eup %2322  ;;  %v1994_v1 = vld [vmem:[%s3158_s8] ss:$0 sm:$0xff] }
 0xf04   :  { %v837_v5 = vadd.f32 1.0, %v2323_v3 }
 0xf06   :  { %2324 = vrcp.f32 %v837_v5 }
 0xf10   :  { %v2325_v27 = vpop.eup %2324 }
 0xf11   :  { %v844_v45 = vmul.f32 %v2325_v27, %v773_v35 }
 0xf75   :  { %v847_v2 = vpop.permute.xlu0 %846 }
 0xf76   :  { %v849_v18 = vmul.f32 %v2325_v27, %v847_v2 }
 0xf78   :  { %851 = vrot.lane.b32.xlu1 %v849_v18, %s2489_s27 }
 0xfea   :  { %v852_v37 = vpop.permute.xlu1 %851 }
 0xfeb   :  { %v854_v29 = vadd.f32 %v852_v37, %v844_v45  ;;  %v2980_v45 = vld [vmem:[%s3156_s6] ss:$0 sm:$0xff] }
 0xfed   :  { %2326 = vtanh.f32 %v854_v29 }
 0xfee   :  { %2328 = vpow2.f32 %v1990_v22 }
 0xff7   :  { %v2327_v4 = vpop.eup %2326 }
 0xff8   :  { %857 = vrot.lane.b32.xlu0 %v2327_v4, %s2489_s27  ;;  %v2329_v48 = vpop.eup %2328 }
 0xff9   :  { %v838_v56 = vadd.f32 1.0, %v2329_v48 }
 0xffb   :  { %2330 = vrcp.f32 %v838_v56 }
0x1005   :  { %v2331_v16 = vpop.eup %2330 }
0x106a   :  { %v858_v23 = vpop.permute.xlu0 %857 }
0x106b   :  { %v860_v39 = vmul.f32 %v2331_v16, %v858_v23 }
0x106d   :  { %861 = vst.msk [vmem:[#allocation2 + $0x30] sm:$0xff] %vm132_vm0, %v860_v39  ;;  %v865_v51 = vpack.c.bf16 %v860_v39, %v860_v39 }
0x106e   :  { %862 = vst.msk [vmem:[#allocation2 + $0x8] sm:$0xff] %vm375_vm3, %v860_v39 }
0x106f   :  { %1991 = vmatmul.mubr.msk.bf16.vlgmr.msra.gmra.mrb[16].mxu1 %vm297_vm4, %v865_v51 }
0x1070   :  { %2097 = vmatprep.mubr.msk.f32.mxu1 %vm2494_vm5, %v2493_v34 }
0x1074   :  { %v950_v58 = vld [vmem:[#allocation2 + $0x30] sm:$0xff] }
0x1075   :  { %v945_v40 = vld [vmem:[#allocation2 + $0x8] sm:$0xff] }
0x1142   :  { %v903_v59 = vpop.f32.mrb[16].mxu1 }
0x1143   :  { %v910_v25 = vadd.f32 %v903_v59, %v863_v24  ;;  %v905_v6 = vpop.f32.mrb[17].mxu1 }
0x1144   :  { %v911_v26 = vadd.f32 %v905_v6, %v864_v28  ;;  %v907_v30 = vpop.f32.mrb[18].mxu1 }
0x1145   :  { %v908_v31 = vpop.f32.mrb[19].mxu1  ;;  %v1992_v33 = vmul.f32 -1.442695, %v910_v25 }
0x1146   :  { %2332 = vtanh.f32 %v911_v26  ;;  %v1993_v14 = vmul.f32 -1.442695, %v911_v26 }
0x1147   :  { %2334 = vpow2.f32 %v1992_v33 }
0x1150   :  { %v2333_v55 = vpop.eup %2332 }
0x1151   :  { %927 = vrot.lane.b32.xlu1 %v2333_v55, %s2489_s27  ;;  %v2335_v46 = vpop.eup %2334 }
0x1152   :  { %v918_v7 = vadd.f32 1.0, %v2335_v46 }
0x1154   :  { %2336 = vrcp.f32 %v918_v7 }
0x115e   :  { %v2337_v12 = vpop.eup %2336 }
0x115f   :  { %v925_v19 = vmul.f32 %v2337_v12, %v854_v29 }
0x11c3   :  { %v928_v15 = vpop.permute.xlu1 %927 }
0x11c4   :  { %v930_v24 = vmul.f32 %v2337_v12, %v928_v15 }
0x11c6   :  { %932 = vrot.lane.b32.xlu0 %v930_v24, %s2489_s27 }
0x1238   :  { %v933_v20 = vpop.permute.xlu0 %932 }
0x1239   :  { %v935_v28 = vadd.f32 %v933_v20, %v925_v19  ;;  %v1064_v19 = vld [vmem:[%s3159_s9 + $0x20] sm:$0xff]  ;;  %v1065_v20 = vld [vmem:[%s3159_s9 + $0x28] sm:$0xff] }
0x123a   :  { %v2192_v9 = vpack.c.bf16 %v1065_v20, %v1064_v19 }
0x123b   :  { %2338 = vtanh.f32 %v935_v28  ;;  %v1066_v28 = vld [vmem:[%s3159_s9 + $0x30] sm:$0xff] }
0x123c   :  { %2340 = vpow2.f32 %v1993_v14  ;;  %2193 = vmatpush3.bf16.msra.mxu1 %v2192_v9  ;;  %v3020_v14 = vld [vmem:[#allocation3] sm:$0xff]  }
0x123d   :  { %2194 = vmatprep.subr.bf16.mxu1 %v2496_v8 }
0x1245   :  { %v2339_v13 = vpop.eup %2338 }
0x1246   :  { %938 = vrot.lane.b32.xlu1 %v2339_v13, %s2489_s27  ;;  %v2341_v36 = vpop.eup %2340 }
0x1247   :  { %v919_v32 = vadd.f32 1.0, %v2341_v36  ;;  %v3024_v36 = vld [vmem:[#allocation3 + $0x8] sm:$0xff]  }
0x1249   :  { %2342 = vrcp.f32 %v919_v32 }
0x1253   :  { %v2343_v53 = vpop.eup %2342 }
0x12b8   :  { %v939_v61 = vpop.permute.xlu1 %938 }
0x12b9   :  { %v941_v38 = vmul.f32 %v2343_v53, %v939_v61 }
0x12bb   :  { %942 = vst.msk [vmem:[#allocation2 + $0x38] sm:$0xff] %vm132_vm0, %v941_v38 }
0x12bc   :  { %943 = vst.msk [vmem:[#allocation2] sm:$0xff] %vm375_vm3, %v941_v38 }
0x12c2   :  { %v951_v35 = vld [vmem:[#allocation2 + $0x38] sm:$0xff] }
0x12c3   :  { %v955_v57 = vpack.c.bf16 %v951_v35, %v950_v58  ;;  %v944_v63 = vld [vmem:[#allocation2] sm:$0xff] }
0x12c4   :  { %v952_v42 = vpack.c.bf16 %v945_v40, %v944_v63 }
0x12c5   :  { %v972_v60 = vrot.slane %v955_v57, 4 }
0x12c7   :  { %2086 = vmatmul.mubr.msk.bf16.vlgmr.msra.gmra.mrb[28].mxu0 %vm297_vm4, %v972_v60 }
0x12c8   :  { %2101 = vmatpush3.bf16.msra.mxu0 %v2242_v11  ;;  %2108 = vmatprep.mubr.msk.bf16.mxu0 %vm297_vm4, %v952_v42  ;;  %v2195_v11 = vpack.c.bf16 %v1067_v10, %v1066_v28 }
0x12c9   :  { %2102 = vmatprep.subr.bf16.mxu0 %v2243_v41 }
0x12ca   :  { %2196 = vmatpush3.bf16.msra.mxu1 %v2195_v11 }
0x12cb   :  { %2116 = vmatprep.subr.bf16.mxu1 %v2493_v34 }
0x12cc   :  { %2103 = vmatpush3.bf16.msra.mxu0 %v2243_v41 }
0x12cd   :  { %2104 = vmatprep.subr.bf16.mxu0 %v2244_v62 }
0x12d0   :  { %2105 = vmatpush3.bf16.msra.mxu0 %v2244_v62 }
0x12d1   :  { %2106 = vmatprep.subr.bf16.mxu0 %v2245_v17 }
0x12d4   :  { %2107 = vmatpush3.bf16.msra.mxu0 %v2245_v17 }
0x12d5   :  { %2140 = vmatprep.subr.bf16.mxu0 %v2493_v34 }
0x12d7   :  { %2109 = vmatmul.mubr.msk.bf16.vlgmr.msra.gmra.mrb[32].mxu0 %vm297_vm4, %v953_v49 }
0x12d8   :  { %2112 = vmatprep.mubr.msk.bf16.mxu0 %vm297_vm4, %v954_v54  ;;  %2141 = vmatpush3.bf16.msra.mxu0 %v3020_v14 }
0x12d9   :  { %2142 = vmatprep.subr.bf16.mxu0 %v2493_v34 }
0x12dc   :  { %2143 = vmatpush3.bf16.msra.mxu0 %v3024_v36 }
0x12dd   :  { %2156 = vmatprep.subr.bf16.mxu0 %v2493_v34 }
0x12df   :  { %2113 = vmatmul.mubr.msk.bf16.gmra.mrb[36].mxu0 %vm297_vm4, %v955_v57 }
0x12e0   :  { %2144 = vmatprep.mubr.msk.bf16.mxu0 %vm2494_vm5, %v2493_v34 }
0x139a   :  { %v1034_v47 = vpop.f32.mrb[28].mxu0 }
0x139b   :  { %v1035_v3 = vadd.f32 %v1994_v1, %v1034_v47  ;;  %v2087_v5 = vpop.f32.mrb[29].mxu0 }
0x139c   :  { %v1037_v27 = vpop.f32.mrb[30].mxu0 }
0x139d   :  { %2344 = vtanh.f32 %v1035_v3  ;;  %v2088_v2 = vpop.f32.mrb[31].mxu0  ;;  %v2000_v31 = vmul.f32 -1.442695, %v1035_v3 }
0x139f   :  { %2346 = vpow2.f32 %v2000_v31 }
0x13a7   :  { %v2345_v18 = vpop.eup %2344 }
0x13a8   :  { %1049 = vrot.lane.b32.xlu0 %v2345_v18, %s2495_s5 }
0x13a9   :  { %v2347_v55 = vpop.eup %2346 }
0x13aa   :  { %v2110_v37 = vpop.f32.mrb[32].mxu0  ;;  %v1043_v33 = vadd.f32 1.0, %v2347_v55 }
0x13ab   :  { %v2983_v29 = vadd.f32 %v2110_v37, %v2980_v45  ;;  %v1235_v4 = vpop.f32.mrb[33].mxu0 }
0x13ac   :  { %v2111_v22 = vpop.f32.mrb[34].mxu0  ;;  %2348 = vrcp.f32 %v1043_v33  ;;  %v1236_v38 = vadd.f32 %v2980_v45, %v1235_v4 }
0x13ad   :  { %v2986_v48 = vadd.f32 %v2111_v22, %v2980_v45  ;;  %v1238_v56 = vpop.f32.mrb[35].mxu0 }
0x13ae   :  { %v2989_v16 = vadd.f32 %v2980_v45, %v1238_v56 }
0x13b2   :  { %v2114_v23 = vpop.f32.mrb[36].mxu0 }
0x13b3   :  { %v2992_v39 = vadd.f32 %v2114_v23, %v2980_v45  ;;  %v1251_v51 = vpop.f32.mrb[37].mxu0 }
0x13b4   :  { %v2995_v59 = vadd.f32 %v2980_v45, %v1251_v51  ;;  %v2115_v25 = vpop.f32.mrb[38].mxu0 }
0x13b5   :  { %v2998_v6 = vadd.f32 %v2115_v25, %v2980_v45  ;;  %v1254_v26 = vpop.f32.mrb[39].mxu0 }
0x13b6   :  { %v3001_v30 = vadd.f32 %v2980_v45, %v1254_v26  ;;  %v2349_v46 = vpop.eup %2348 }
0x13b7   :  { %v1047_v15 = vmul.f32 0.0, %v2349_v46 }
0x141a   :  { %v1050_v7 = vpop.permute.xlu0 %1049 }
0x141b   :  { %v1052_v12 = vmul.f32 %v2349_v46, %v1050_v7 }
0x141d   :  { %1054 = vrot.lane.b32.xlu1 %v1052_v12, %s2495_s5 }
0x148f   :  { %v1055_v24 = vpop.permute.xlu1 %1054 }
0x1490   :  { %v1057_v50 = vadd.f32 %v1055_v24, %v1047_v15 }
0x1492   :  { %2350 = vtanh.f32 %v1057_v50 }
0x149c   :  { %v2351_v13 = vpop.eup %2350 }
0x149d   :  { %1060 = vrot.lane.b32.xlu0 %v2351_v13, %s2495_s5 }
0x150f   :  { %v1061_v32 = vpop.permute.xlu0 %1060 }
0x1510   :  { %v1063_v53 = vmul.f32 %v2349_v46, %v1061_v32 }
0x1512   :  { %1076 = vrot.lane.b32.xlu1 %v1063_v53, %s2489_s27 }
0x1584   :  { %v1077_v61 = vpop.permute.xlu1 %1076 }
0x1585   :  { %2098 = vmatmul.mubr.msk.f32.vlgmr.msra.gmra.mrb[20].mxu1 %vm132_vm0, %v1077_v61 }
0x1586   :  { %2117 = vmatpush3.bf16.msra.mxu1 %v3020_v14  ;;  %2120 = vmatprep.mubr.msk.bf16.mxu1 %vm2494_vm5, %v2493_v34 }
0x1587   :  { %2118 = vmatprep.subr.bf16.mxu1 %v2493_v34 }
0x158a   :  { %2119 = vmatpush3.bf16.msra.mxu1 %v3024_v36 }
0x158b   :  { %2124 = vmatprep.subr.bf16.mxu1 %v2493_v34 }
0x158d   :  { %2121 = vmatmul.mubr.bf16.vlgmr.msra.gmra.mrb[24].mxu1 %v2492_v0 }
0x158e   :  { %2125 = vmatpush3.bf16.msra.mxu1 %v3020_v14  ;;  %2128 = vmatprep.mubr.msk.bf16.mxu1 %vm2494_vm5, %v2493_v34 }
0x158f   :  { %2126 = vmatprep.subr.bf16.mxu1 %v2493_v34 }
0x1592   :  { %2127 = vmatpush3.bf16.msra.mxu1 %v3024_v36 }
0x1593   :  { %2132 = vmatprep.subr.bf16.mxu1 %v2493_v34 }
0x1660   :  { %v1318_v58 = vpop.f32.mrb[24].mxu1 }
0x1661   :  { %v1324_v35 = vadd.f32 %v1318_v58, %v1236_v38  ;;  %v2122_v57 = vpop.f32.mrb[25].mxu1 }
0x1662   :  { %v1321_v63 = vpop.f32.mrb[26].mxu1 }
0x1663   :  { %2352 = vtanh.f32 %v1324_v35  ;;  %v2123_v60 = vpop.f32.mrb[27].mxu1  ;;  %v2014_v40 = vmul.f32 -1.442695, %v1324_v35 }
0x1665   :  { %2354 = vpow2.f32 %v2014_v40 }
0x166d   :  { %v2353_v0 = vpop.eup %2352 }
0x166e   :  { %1334 = vrot.lane.b32.xlu0 %v2353_v0, %s2495_s5 }
0x166f   :  { %v2355_v41 = vpop.eup %2354 }
0x1670   :  { %v1328_v42 = vadd.f32 1.0, %v2355_v41 }
0x1672   :  { %2356 = vrcp.f32 %v1328_v42 }
0x167c   :  { %v2357_v62 = vpop.eup %2356 }
0x167d   :  { %v1332_v44 = vmul.f32 0.0, %v2357_v62 }
0x16e0   :  { %v1335_v17 = vpop.permute.xlu0 %1334 }
0x16e1   :  { %v1337_v21 = vmul.f32 %v2357_v62, %v1335_v17 }
0x16e3   :  { %1339 = vrot.lane.b32.xlu1 %v1337_v21, %s2495_s5 }
0x1755   :  { %v1340_v43 = vpop.permute.xlu1 %1339 }
0x1756   :  { %v1342_v49 = vadd.f32 %v1340_v43, %v1332_v44 }
0x1758   :  { %2358 = vtanh.f32 %v1342_v49 }
0x1762   :  { %v2359_v52 = vpop.eup %2358 }
0x1763   :  { %1345 = vrot.lane.b32.xlu0 %v2359_v52, %s2495_s5 }
0x17d5   :  { %v1346_v54 = vpop.permute.xlu0 %1345 }
0x17d6   :  { %v1348_v1 = vmul.f32 %v2357_v62, %v1346_v54 }
0x17d8   :  { %v1349_v47 = vpack.c.bf16 %v1348_v1, %v1348_v1 }
0x17da   :  { %1351 = vrot.lane.b32.xlu1 %v1349_v47, %s2489_s27 }
0x184c   :  { %v1352_v3 = vpop.permute.xlu1 %1351 }
0x184d   :  { %2129 = vmatmul.mubr.msk.bf16.vlgmr.msra.gmra.mrb[28].mxu1 %vm132_vm0, %v1352_v3 }
0x184e   :  { %2133 = vmatpush3.bf16.msra.mxu1 %v3020_v14  ;;  %2136 = vmatprep.mubr.msk.bf16.mxu1 %vm2494_vm5, %v2493_v34 }
0x184f   :  { %2134 = vmatprep.subr.bf16.mxu1 %v2493_v34 }
0x1852   :  { %2135 = vmatpush3.bf16.msra.mxu1 %v3024_v36 }
0x1853   :  { %2148 = vmatprep.subr.bf16.mxu1 %v2493_v34 }
0x1920   :  { %v1390_v5 = vpop.f32.mrb[28].mxu1 }
0x1921   :  { %v1396_v27 = vadd.f32 %v1390_v5, %v2989_v16  ;;  %v2130_v2 = vpop.f32.mrb[29].mxu1 }
0x1922   :  { %v1393_v18 = vpop.f32.mrb[30].mxu1 }
0x1923   :  { %2360 = vtanh.f32 %v1396_v27  ;;  %v2131_v45 = vpop.f32.mrb[31].mxu1  ;;  %v2016_v4 = vmul.f32 -1.442695, %v1396_v27 }
0x1925   :  { %2362 = vpow2.f32 %v2016_v4 }
0x192d   :  { %v2361_v37 = vpop.eup %2360 }
0x192e   :  { %1406 = vrot.lane.b32.xlu0 %v2361_v37, %s2495_s5 }
0x192f   :  { %v2363_v22 = vpop.eup %2362 }
0x1930   :  { %v1400_v56 = vadd.f32 1.0, %v2363_v22 }
0x1932   :  { %2364 = vrcp.f32 %v1400_v56 }
0x193c   :  { %v2365_v23 = vpop.eup %2364 }
0x193d   :  { %v1404_v26 = vmul.f32 %v2365_v23, %v1342_v49 }
0x19a0   :  { %v1407_v51 = vpop.permute.xlu0 %1406 }
0x19a1   :  { %v1409_v25 = vmul.f32 %v2365_v23, %v1407_v51 }
0x19a3   :  { %1411 = vrot.lane.b32.xlu1 %v1409_v25, %s2495_s5 }
0x1a15   :  { %v1412_v31 = vpop.permute.xlu1 %1411 }
0x1a16   :  { %v1414_v16 = vadd.f32 %v1412_v31, %v1404_v26 }
0x1a18   :  { %2366 = vtanh.f32 %v1414_v16 }
0x1a22   :  { %v2367_v55 = vpop.eup %2366 }
0x1a23   :  { %1417 = vrot.lane.b32.xlu0 %v2367_v55, %s2495_s5 }
0x1a95   :  { %v1418_v33 = vpop.permute.xlu0 %1417 }
0x1a96   :  { %v1420_v46 = vmul.f32 %v2365_v23, %v1418_v33 }
0x1a98   :  { %v1421_v7 = vpack.c.bf16 %v1420_v46, %v1420_v46 }
0x1a9a   :  { %1423 = vrot.lane.b32.xlu1 %v1421_v7, %s2489_s27 }
0x1b0c   :  { %v1424_v12 = vpop.permute.xlu1 %1423 }
0x1b0d   :  { %2137 = vmatmul.mubr.msk.bf16.vlgmr.msra.gmra.mrb[32].mxu1 %vm132_vm0, %v1424_v12 }
0x1b0e   :  { %2149 = vmatpush3.bf16.msra.mxu1 %v3020_v14  ;;  %2152 = vmatprep.mubr.msk.bf16.mxu1 %vm2494_vm5, %v2493_v34 }
0x1b0f   :  { %2150 = vmatprep.subr.bf16.mxu1 %v2493_v34 }
0x1b12   :  { %2151 = vmatpush3.bf16.msra.mxu1 %v3024_v36 }
0x1b13   :  { %2164 = vmatprep.subr.bf16.mxu1 %v2493_v34 }
0x1be0   :  { %v1462_v15 = vpop.f32.mrb[32].mxu1 }
0x1be1   :  { %v1468_v24 = vadd.f32 %v1462_v15, %v2983_v29  ;;  %v2138_v50 = vpop.f32.mrb[33].mxu1 }
0x1be2   :  { %v1465_v19 = vpop.f32.mrb[34].mxu1 }
0x1be3   :  { %2368 = vtanh.f32 %v1468_v24  ;;  %v2139_v20 = vpop.f32.mrb[35].mxu1  ;;  %v2018_v9 = vmul.f32 -1.442695, %v1468_v24 }
0x1be5   :  { %2370 = vpow2.f32 %v2018_v9 }
0x1bed   :  { %v2369_v28 = vpop.eup %2368 }
0x1bee   :  { %1478 = vrot.lane.b32.xlu0 %v2369_v28, %s2495_s5 }
0x1bef   :  { %v2371_v10 = vpop.eup %2370 }
0x1bf0   :  { %v1472_v11 = vadd.f32 1.0, %v2371_v10 }
0x1bf2   :  { %2372 = vrcp.f32 %v1472_v11 }
0x1bfc   :  { %v2373_v13 = vpop.eup %2372 }
0x1bfd   :  { %v1476_v61 = vmul.f32 %v2373_v13, %v1414_v16 }
0x1c60   :  { %v1479_v32 = vpop.permute.xlu0 %1478 }
0x1c61   :  { %v1481_v53 = vmul.f32 %v2373_v13, %v1479_v32 }
0x1c63   :  { %1483 = vrot.lane.b32.xlu1 %v1481_v53, %s2495_s5 }
0x1cd5   :  { %v1484_v38 = vpop.permute.xlu1 %1483 }
0x1cd6   :  { %v1486_v29 = vadd.f32 %v1484_v38, %v1476_v61 }
0x1cd8   :  { %2374 = vtanh.f32 %v1486_v29 }
0x1ce2   :  { %v2375_v58 = vpop.eup %2374 }
0x1ce3   :  { %1489 = vrot.lane.b32.xlu0 %v2375_v58, %s2495_s5 }
0x1d55   :  { %v1490_v35 = vpop.permute.xlu0 %1489 }
0x1d56   :  { %v1492_v57 = vmul.f32 %v2373_v13, %v1490_v35 }
0x1d58   :  { %v1493_v63 = vpack.c.bf16 %v1492_v57, %v1492_v57 }
0x1d5a   :  { %1495 = vrot.lane.b32.xlu1 %v1493_v63, %s2489_s27 }
0x1dcc   :  { %v1496_v60 = vpop.permute.xlu1 %1495 }
0x1dcd   :  { %2145 = vmatmul.mubr.msk.bf16.vlgmr.msra.gmra.mrb[40].mxu0 %vm132_vm0, %v1496_v60 }
0x1dce   :  { %2157 = vmatpush3.bf16.msra.mxu0 %v3020_v14  ;;  %2160 = vmatprep.mubr.msk.bf16.mxu0 %vm2494_vm5, %v2493_v34 }
0x1dcf   :  { %2158 = vmatprep.subr.bf16.mxu0 %v2493_v34 }
0x1dd2   :  { %2159 = vmatpush3.bf16.msra.mxu0 %v3024_v36 }
0x1dd3   :  { %2172 = vmatprep.subr.bf16.mxu0 %v2493_v34 }
0x1ea0   :  { %v1534_v0 = vpop.f32.mrb[40].mxu0 }
0x1ea1   :  { %v1540_v40 = vadd.f32 %v1534_v0, %v2986_v48  ;;  %v2146_v41 = vpop.f32.mrb[41].mxu0 }
0x1ea2   :  { %v1537_v42 = vpop.f32.mrb[42].mxu0 }
0x1ea3   :  { %2376 = vtanh.f32 %v1540_v40  ;;  %v2147_v62 = vpop.f32.mrb[43].mxu0  ;;  %v2020_v21 = vmul.f32 -1.442695, %v1540_v40 }
0x1ea5   :  { %2378 = vpow2.f32 %v2020_v21 }
0x1ead   :  { %v2377_v17 = vpop.eup %2376 }
0x1eae   :  { %1550 = vrot.lane.b32.xlu0 %v2377_v17, %s2495_s5 }
0x1eaf   :  { %v2379_v44 = vpop.eup %2378 }
0x1eb0   :  { %v1544_v43 = vadd.f32 1.0, %v2379_v44 }
0x1eb2   :  { %2380 = vrcp.f32 %v1544_v43 }
0x1ebc   :  { %v2381_v49 = vpop.eup %2380 }
0x1ebd   :  { %v1548_v1 = vmul.f32 %v2381_v49, %v1486_v29 }
0x1f20   :  { %v1551_v52 = vpop.permute.xlu0 %1550 }
0x1f21   :  { %v1553_v54 = vmul.f32 %v2381_v49, %v1551_v52 }
0x1f23   :  { %1555 = vrot.lane.b32.xlu1 %v1553_v54, %s2495_s5 }
0x1f95   :  { %v1556_v47 = vpop.permute.xlu1 %1555 }
0x1f96   :  { %v1558_v48 = vadd.f32 %v1556_v47, %v1548_v1 }
0x1f98   :  { %2382 = vtanh.f32 %v1558_v48 }
0x1fa2   :  { %v2383_v3 = vpop.eup %2382 }
0x1fa3   :  { %1561 = vrot.lane.b32.xlu0 %v2383_v3, %s2495_s5 }
0x2015   :  { %v1562_v5 = vpop.permute.xlu0 %1561 }
0x2016   :  { %v1564_v27 = vmul.f32 %v2381_v49, %v1562_v5 }
0x2018   :  { %v1565_v2 = vpack.c.bf16 %v1564_v27, %v1564_v27 }
0x201a   :  { %1567 = vrot.lane.b32.xlu1 %v1565_v2, %s2489_s27 }
0x208c   :  { %v1568_v18 = vpop.permute.xlu1 %1567 }
0x208d   :  { %2153 = vmatmul.mubr.msk.bf16.vlgmr.msra.gmra.mrb[36].mxu1 %vm132_vm0, %v1568_v18 }
0x208e   :  { %2165 = vmatpush3.bf16.msra.mxu1 %v3020_v14  ;;  %2168 = vmatprep.mubr.msk.bf16.mxu1 %vm2494_vm5, %v2493_v34 }
0x208f   :  { %2166 = vmatprep.subr.bf16.mxu1 %v2493_v34 }
0x2092   :  { %2167 = vmatpush3.bf16.msra.mxu1 %v3024_v36 }
0x2093   :  { %2197 = vmatprep.subr.bf16.mxu1 %v2496_v8 }
0x2160   :  { %v1606_v45 = vpop.f32.mrb[36].mxu1 }
0x2161   :  { %v1612_v37 = vadd.f32 %v1606_v45, %v2995_v59  ;;  %v2154_v4 = vpop.f32.mrb[37].mxu1 }
0x2162   :  { %v1609_v22 = vpop.f32.mrb[38].mxu1 }
0x2163   :  { %2384 = vtanh.f32 %v1612_v37  ;;  %v2155_v56 = vpop.f32.mrb[39].mxu1  ;;  %v2022_v51 = vmul.f32 -1.442695, %v1612_v37 }
0x2165   :  { %2386 = vpow2.f32 %v2022_v51 }
0x216d   :  { %v2385_v23 = vpop.eup %2384 }
0x216e   :  { %1622 = vrot.lane.b32.xlu0 %v2385_v23, %s2495_s5 }
0x216f   :  { %v2387_v25 = vpop.eup %2386 }
0x2170   :  { %v1616_v26 = vadd.f32 1.0, %v2387_v25 }
0x2172   :  { %2388 = vrcp.f32 %v1616_v26 }
0x217c   :  { %v2389_v31 = vpop.eup %2388 }
0x217d   :  { %v1620_v33 = vmul.f32 %v2389_v31, %v1558_v48 }
0x21e0   :  { %v1623_v16 = vpop.permute.xlu0 %1622 }
0x21e1   :  { %v1625_v55 = vmul.f32 %v2389_v31, %v1623_v16 }
0x21e3   :  { %1627 = vrot.lane.b32.xlu1 %v1625_v55, %s2495_s5 }
0x2255   :  { %v1628_v46 = vpop.permute.xlu1 %1627 }
0x2256   :  { %v1630_v59 = vadd.f32 %v1628_v46, %v1620_v33  ;;  %v1853_v33 = vld [vmem:[%s3159_s9] sm:$0xff]  ;;  %v1854_v46 = vld [vmem:[%s3159_s9 + $0x8] sm:$0xff] }
0x2258   :  { %2390 = vtanh.f32 %v1630_v59 }
0x2262   :  { %v2391_v7 = vpop.eup %2390 }
0x2263   :  { %1633 = vrot.lane.b32.xlu0 %v2391_v7, %s2495_s5  ;;  %v2198_v7 = vpack.c.bf16 %v1854_v46, %v1853_v33 }
0x22d5   :  { %v1634_v12 = vpop.permute.xlu0 %1633 }
0x22d6   :  { %v1636_v15 = vmul.f32 %v2389_v31, %v1634_v12  ;;  %v1856_v12 = vld [vmem:[%s3159_s9 + $0x18] sm:$0xff] }
0x22d8   :  { %v1637_v24 = vpack.c.bf16 %v1636_v15, %v1636_v15 }
0x22da   :  { %1639 = vrot.lane.b32.xlu1 %v1637_v24, %s2489_s27 }
0x234c   :  { %v1640_v50 = vpop.permute.xlu1 %1639 }
0x234d   :  { %2161 = vmatmul.mubr.msk.bf16.vlgmr.msra.gmra.mrb[44].mxu0 %vm132_vm0, %v1640_v50 }
0x234e   :  { %2173 = vmatpush3.bf16.msra.mxu0 %v3020_v14  ;;  %2176 = vmatprep.mubr.msk.bf16.mxu0 %vm2494_vm5, %v2493_v34 }
0x234f   :  { %2174 = vmatprep.subr.bf16.mxu0 %v2493_v34 }
0x2352   :  { %2175 = vmatpush3.bf16.msra.mxu0 %v3024_v36 }
0x2420   :  { %v1678_v19 = vpop.f32.mrb[44].mxu0 }
0x2421   :  { %v1684_v20 = vadd.f32 %v1678_v19, %v3001_v30  ;;  %v2162_v28 = vpop.f32.mrb[45].mxu0 }
0x2422   :  { %v1681_v9 = vpop.f32.mrb[46].mxu0  ;;  %v2001_v28 = vld [vmem:[%s3160_s10] ss:$0 sm:$0xff] }
0x2423   :  { %2392 = vtanh.f32 %v1684_v20  ;;  %v2163_v10 = vpop.f32.mrb[47].mxu0  ;;  %v2024_v13 = vmul.f32 -1.442695, %v1684_v20 }
0x2425   :  { %2394 = vpow2.f32 %v2024_v13 }
0x242d   :  { %v2393_v11 = vpop.eup %2392 }
0x242e   :  { %1694 = vrot.lane.b32.xlu0 %v2393_v11, %s2495_s5 }
0x242f   :  { %v2395_v14 = vpop.eup %2394 }
0x2430   :  { %v1688_v32 = vadd.f32 1.0, %v2395_v14 }
0x2432   :  { %2396 = vrcp.f32 %v1688_v32 }
0x243c   :  { %v2397_v53 = vpop.eup %2396 }
0x243d   :  { %v1692_v36 = vmul.f32 %v2397_v53, %v1630_v59  ;;  %v1855_v59 = vld [vmem:[%s3159_s9 + $0x10] sm:$0xff]  ;;  %s2497_s9 = smov [#allocation8]  }
0x243e   :  { %v2201_v15 = vpack.c.bf16 %v1856_v12, %v1855_v59  ;;  %s1941_s19 = sshll.u32 %s2497_s9, 4  ;;  %s1942_s19 = int_to_ptr.vmem [resolvable:$true] %s1941_s19 }
0x243f   :  { %s2460_s20 = scalar_lea.vmem %s1942_s19, 128  ;;  %p2465_p3 = scmp.lt.s32.totalorder %s1942_s19, %s1942_s19 }
0x2440   :  { %p2461_p2 = scmp.ne.s32.totalorder %s1942_s19, %s2460_s20  ;;  %p2466_p4 = scmp.lt.s32.totalorder %s2460_s20, %s2460_s20 }
0x2442   :  { %p2467_p5 = por %p2466_p4, %p2465_p3 }
0x2444   :  { %p2468_p6 = pnand %p2467_p5, %p2461_p2 }
0x24a0   :  { %v1695_v61 = vpop.permute.xlu0 %1694 }
0x24a1   :  { %v1697_v38 = vmul.f32 %v2397_v53, %v1695_v61 }
0x24a3   :  { %1699 = vrot.lane.b32.xlu1 %v1697_v38, %s2495_s5 }
0x2515   :  { %v1700_v29 = vpop.permute.xlu1 %1699 }
0x2516   :  { %v1702_v30 = vadd.f32 %v1700_v29, %v1692_v36 }
0x2518   :  { %2398 = vtanh.f32 %v1702_v30 }
0x2522   :  { %v2399_v58 = vpop.eup %2398 }
0x2523   :  { %1705 = vrot.lane.b32.xlu0 %v2399_v58, %s2495_s5 }
0x2595   :  { %v1706_v35 = vpop.permute.xlu0 %1705 }
0x2596   :  { %v1708_v57 = vmul.f32 %v2397_v53, %v1706_v35 }
0x2598   :  { %v1709_v63 = vpack.c.bf16 %v1708_v57, %v1708_v57 }
0x259a   :  { %1711 = vrot.lane.b32.xlu1 %v1709_v63, %s2489_s27 }
0x260c   :  { %v1712_v60 = vpop.permute.xlu1 %1711 }
0x260d   :  { %2169 = vmatmul.mubr.msk.bf16.vlgmr.msra.gmra.mrb[40].mxu1 %vm132_vm0, %v1712_v60 }
0x260e   :  { %2188 = vmatprep.mubr.msk.f32.mxu1 %vm2494_vm5, %v2493_v34  ;;  %2199 = vmatpush3.bf16.msra.mxu1 %v2198_v7 }
0x260f   :  { %2200 = vmatprep.subr.bf16.mxu1 %v2496_v8 }
0x2612   :  { %2202 = vmatpush3.bf16.msra.mxu1 %v2201_v15 }
0x26e0   :  { %v1750_v0 = vpop.f32.mrb[40].mxu1 }
0x26e1   :  { %v1756_v40 = vadd.f32 %v1750_v0, %v2992_v39  ;;  %v2170_v41 = vpop.f32.mrb[41].mxu1 }
0x26e2   :  { %v1753_v42 = vpop.f32.mrb[42].mxu1 }
0x26e3   :  { %2400 = vtanh.f32 %v1756_v40  ;;  %v2171_v62 = vpop.f32.mrb[43].mxu1  ;;  %v2026_v21 = vmul.f32 -1.442695, %v1756_v40 }
0x26e5   :  { %2402 = vpow2.f32 %v2026_v21 }
0x26ed   :  { %v2401_v17 = vpop.eup %2400 }
0x26ee   :  { %1766 = vrot.lane.b32.xlu0 %v2401_v17, %s2495_s5 }
0x26ef   :  { %v2403_v44 = vpop.eup %2402 }
0x26f0   :  { %v1760_v43 = vadd.f32 1.0, %v2403_v44 }
0x26f2   :  { %2404 = vrcp.f32 %v1760_v43 }
0x26fc   :  { %v2405_v49 = vpop.eup %2404 }
0x26fd   :  { %v1764_v34 = vmul.f32 %v2405_v49, %v1702_v30 }
0x2760   :  { %v1767_v52 = vpop.permute.xlu0 %1766 }
0x2761   :  { %v1769_v54 = vmul.f32 %v2405_v49, %v1767_v52 }
0x2763   :  { %1771 = vrot.lane.b32.xlu1 %v1769_v54, %s2495_s5 }
0x27d5   :  { %v1772_v1 = vpop.permute.xlu1 %1771 }
0x27d6   :  { %v1774_v39 = vadd.f32 %v1772_v1, %v1764_v34 }
0x27d8   :  { %2406 = vtanh.f32 %v1774_v39 }
0x27e2   :  { %v2407_v47 = vpop.eup %2406 }
0x27e3   :  { %1777 = vrot.lane.b32.xlu0 %v2407_v47, %s2495_s5 }
0x2855   :  { %v1778_v48 = vpop.permute.xlu0 %1777 }
0x2856   :  { %v1780_v3 = vmul.f32 %v2405_v49, %v1778_v48 }
0x2858   :  { %v1781_v5 = vpack.c.bf16 %v1780_v3, %v1780_v3 }
0x285a   :  { %1783 = vrot.lane.b32.xlu1 %v1781_v5, %s2489_s27 }
0x28cc   :  { %v1784_v27 = vpop.permute.xlu1 %1783 }
0x28cd   :  { %2177 = vmatmul.mubr.msk.bf16.vlgmr.msra.gmra.mrb[48].mxu0 %vm132_vm0, %v1784_v27 }
0x29a0   :  { %v1822_v2 = vpop.f32.mrb[48].mxu0 }
0x29a1   :  { %v1828_v18 = vadd.f32 %v1822_v2, %v2998_v6  ;;  %v2178_v45 = vpop.f32.mrb[49].mxu0 }
0x29a2   :  { %v1825_v37 = vpop.f32.mrb[50].mxu0 }
0x29a3   :  { %2408 = vtanh.f32 %v1828_v18  ;;  %v2179_v4 = vpop.f32.mrb[51].mxu0  ;;  %v2028_v56 = vmul.f32 -1.442695, %v1828_v18 }
0x29a5   :  { %2410 = vpow2.f32 %v2028_v56 }
0x29ad   :  { %v2409_v22 = vpop.eup %2408 }
0x29ae   :  { %1838 = vrot.lane.b32.xlu0 %v2409_v22, %s2495_s5 }
0x29af   :  { %v2411_v23 = vpop.eup %2410 }
0x29b0   :  { %v1832_v51 = vadd.f32 1.0, %v2411_v23 }
0x29b2   :  { %2412 = vrcp.f32 %v1832_v51 }
0x29bc   :  { %v2413_v25 = vpop.eup %2412 }
0x29bd   :  { %v1836_v16 = vmul.f32 %v2413_v25, %v1774_v39 }
0x2a20   :  { %v1839_v26 = vpop.permute.xlu0 %1838 }
0x2a21   :  { %v1841_v31 = vmul.f32 %v2413_v25, %v1839_v26 }
0x2a23   :  { %1843 = vrot.lane.b32.xlu1 %v1841_v31, %s2495_s5 }
0x2a95   :  { %v1844_v55 = vpop.permute.xlu1 %1843 }
0x2a96   :  { %v1846_v6 = vadd.f32 %v1844_v55, %v1836_v16 }
0x2a98   :  { %2414 = vtanh.f32 %v1846_v6 }
0x2aa2   :  { %v2415_v24 = vpop.eup %2414 }
0x2aa3   :  { %1849 = vrot.lane.b32.xlu0 %v2415_v24, %s2495_s5 }
0x2b15   :  { %v1850_v50 = vpop.permute.xlu0 %1849 }
0x2b16   :  { %v1852_v19 = vmul.f32 %v2413_v25, %v1850_v50 }
0x2b18   :  { %1858 = vrot.lane.b32.xlu1 %v1852_v19, %s2489_s27 }
0x2b8a   :  { %v1859_v20 = vpop.permute.xlu1 %1858 }
0x2b8b   :  { %2189 = vmatmul.mubr.msk.f32.vlgmr.msra.gmra.mrb[20].mxu1 %vm132_vm0, %v1859_v20 }
0x2c5e   :  { %v1928_v9 = vpop.f32.mrb[20].mxu1 }
0x2c5f   :  { %v2203_v8 = vadd.f32 %v2001_v28, %v1928_v9  ;;  %v2190_v10 = vpop.f32.mrb[21].mxu1 }
0x2c61   :  { %1934 = vst.msk [vmem:[#allocation8] sm:$0xff] %vm1933_vm6, %v2203_v8 }
0x2c62   :  { %2471 = shalt.err (!%p2468_p6)
}
0x2c63   :  { %s2472_s21 = scalar_lea.hbm %s3161_s11, 128 }
0x2c64   :  { %p2473_p7 = scmp.ne.s32.totalorder %s3161_s11, %s2472_s21  ;;  %p2476_p8 = scmp.lt.u32.totalorder %s2472_s21, %s3161_s11 }
0x2c66   :  { %p2478_p9 = pnand %p2476_p8, %p2473_p7 }
0x2c68   :  { %2481 = shalt.err (!%p2478_p9)
}
0x2c69   :  { %1944 = dma.vmem_to_hbm [thread:$0]  %s1942_s19, 128, %s3161_s11, [#allocation5]  }
0x2c6a   :  { %2486 = dma.done.wait [#allocation5], 128  }
0x2c6b   :  { %2487 = vsyncadd [#allocation5], 4294967168 }
0x2c6c   :  { %1948 = vsyncpa [#allocation4], 1 }
0x2c6d   :  { %1949 = vsyncpa [#allocation7], 1 }
0x2c6e   :  { %1950 = vsyncpa [#allocation5], 1 }

</bundles_post_ra>
